<compile_context>
chip_gen: v5e
topology: v5e:2x2
jax: 0.10.0
libtpu: 0.0.40
codegen_flags: <defaults>
</compile_context>

<pallas_src>
import functools

import jax
import jax.numpy as jnp
from jax import lax
from jax.experimental import pallas as pl
from jax.experimental.pallas import tpu as pltpu


def _read_params(w_ref, b_ref, cout, cin, kh, kw):
    """Hoist all weight/bias scalars out of the compute loops (SMEM reads)."""
    wts = [[[[w_ref[((co * cin + ci) * kh + r) * kw + c]
              for c in range(kw)]
             for r in range(kh)]
            for ci in range(cin)]
           for co in range(cout)]
    bs = [b_ref[co] for co in range(cout)]
    return wts, bs


def _conv_kernel_batched(x_ref, w_ref, b_ref, o_ref, *, cin, cout, kh, kw, ho, wo):
    # x_ref : (cin, H, W, Nb)   -- W on sublanes, batch block on lanes
    # w_ref : (cout*cin*kh*kw,) flat OIHW weights in SMEM
    # b_ref : (cout,)           bias in SMEM
    # o_ref : (cout, HO, WO, Nb)
    nb = x_ref.shape[-1]
    wts, bs = _read_params(w_ref, b_ref, cout, cin, kh, kw)

    for ro in range(ho):                                   # output-row chunk
        # 3 register-resident accumulators, initialized with the bias.
        accs = [jnp.full((wo, nb), bs[co], jnp.float32) for co in range(cout)]
        for ci in range(cin):
            for r in range(kh):
                row = x_ref[ci, ro + r].astype(jnp.float32)     # (W, Nb) vld
                for c in range(kw):
                    tap = row[c:c + wo, :]                       # (WO, Nb)
                    for co in range(cout):                       # reuse tap x3
                        accs[co] = accs[co] + tap * wts[co][ci][r][c]
        for co in range(cout):                       # one store per output vreg
            o_ref[co, ro] = accs[co].astype(o_ref.dtype)


def _conv_kernel_small(x_ref, w_ref, b_ref, o_ref, *, cin, cout, kh, kw, ho, wo, n):
    # Small-batch path: (W, N) folded onto lanes (W-major, N-minor).
    # x_ref : (cin, H, W*N); o_ref : (cout, HO, WO*N).  Whole problem is a few
    # vregs, so a single chunk: 27 MACs per channel, one store per channel.
    wts, bs = _read_params(w_ref, b_ref, cout, cin, kh, kw)
    x = x_ref[...].astype(jnp.float32)                    # tiny, load once
    accs = [jnp.full((ho, wo * n), bs[co], jnp.float32) for co in range(cout)]
    for ci in range(cin):
        for r in range(kh):
            for c in range(kw):
                tap = x[ci, r:r + ho, c * n:(c + wo) * n]   # (HO, WO*N)
                for co in range(cout):
                    accs[co] = accs[co] + tap * wts[co][ci][r][c]
    for co in range(cout):
        o_ref[co] = accs[co].astype(o_ref.dtype)


_SMEM_SPEC = pl.BlockSpec(memory_space=pltpu.MemorySpace.SMEM)


def identity_conv(x, weight, bias, *, block_n=512):
    """Forward of IdentityConv: Conv2d(3,3,k=3,stride=1,pad=0,bias)(x + 0.0).

    x: (N, Cin, H, W) f32 NCHW; weight: (Cout, Cin, 3, 3) OIHW; bias: (Cout,).
    Returns (N, Cout, H-2, W-2), matching PyTorch.
    """
    n, cin, h, w = x.shape
    cout, cin_w, kh, kw = weight.shape
    assert cin == cin_w
    ho, wo = h - kh + 1, w - kw + 1          # stride=1, padding=0 defaults
    w_flat = weight.reshape(-1)

    if n < 128:
        # ---- small-batch path: fold (W, N) onto the lane axis ---------------
        xt = jnp.transpose(x, (1, 2, 3, 0)).reshape(cin, h, w * n)
        kernel = functools.partial(_conv_kernel_small, cin=cin, cout=cout,
                                   kh=kh, kw=kw, ho=ho, wo=wo, n=n)
        out = pl.pallas_call(
            kernel,
            grid=(1,),
            in_specs=[pl.BlockSpec((cin, h, w * n), lambda b: (0, 0, 0)),
                      _SMEM_SPEC, _SMEM_SPEC],
            out_specs=pl.BlockSpec((cout, ho, wo * n), lambda b: (0, 0, 0)),
            out_shape=jax.ShapeDtypeStruct((cout, ho, wo * n), x.dtype),
        )(xt, w_flat, bias)
        out = out.reshape(cout, ho, wo, n)
        return jnp.transpose(out, (3, 0, 1, 2))

    # ---- large-batch path: batch on lanes, grid over batch blocks -----------
    block_n = max(128, (block_n // 128) * 128)
    # Aim for >= 2 grid steps so the "parallel" axis can shard across the two
    # TensorCores on v7x (no effect on single-TC v5e/v6e).
    half = pl.cdiv(pl.cdiv(n, 2), 128) * 128
    nb = max(128, min(block_n, half))
    n_pad = pl.cdiv(n, nb) * nb

    xt = jnp.transpose(x, (1, 2, 3, 0))                    # (Cin, H, W, N)
    if n_pad != n:
        # Fused with the transpose copy by XLA under jit (single HBM pass);
        # padded lanes compute garbage that is sliced off below.
        xt = jnp.pad(xt, ((0, 0), (0, 0), (0, 0), (0, n_pad - n)))

    kernel = functools.partial(_conv_kernel_batched, cin=cin, cout=cout,
                               kh=kh, kw=kw, ho=ho, wo=wo)
    out_t = pl.pallas_call(
        kernel,
        grid=(n_pad // nb,),
        in_specs=[pl.BlockSpec((cin, h, w, nb), lambda b: (0, 0, 0, b)),
                  _SMEM_SPEC, _SMEM_SPEC],
        out_specs=pl.BlockSpec((cout, ho, wo, nb), lambda b: (0, 0, 0, b)),
        out_shape=jax.ShapeDtypeStruct((cout, ho, wo, n_pad), x.dtype),
        compiler_params=pltpu.CompilerParams(
            dimension_semantics=("parallel",),
            # ~6 MiB/step at nb=512 (2x input + 2x output tile); explicit cap
            # keeps double-buffering safe on v5e (16 MiB scoped default) and
            # v7x (64 MiB physical VMEM).
            vmem_limit_bytes=32 * 1024 * 1024,
        ),
    )(xt, w_flat, bias)
    return jnp.transpose(out_t[..., :n], (3, 0, 1, 2))


if __name__ == "__main__":
    key = jax.random.PRNGKey(0)
    kx, kb, kx2 = jax.random.split(key, 3)

    # Deterministic parameters (the test passes an "identity" 3x3 kernel).
    cin = cout = 3
    eye = jnp.eye(cout, cin, dtype=jnp.float32)   # weight[o, i, 1, 1] = delta(o, i)
    weight = jnp.zeros((cout, cin, 3, 3), jnp.float32).at[:, :, 1, 1].set(eye)
    # Conv2d default bias init: U(-1/sqrt(fan_in), 1/sqrt(fan_in)), fan_in = 3*3*3
    bound = 1.0 / jnp.sqrt(jnp.float32(cin * 3 * 3))
    bias = jax.random.uniform(kb, (cout,), jnp.float32, -bound, bound)

    def ref_conv(xx):
        return lax.conv_general_dilated(
            xx + 0.0, weight, window_strides=(1, 1), padding="VALID",
            dimension_numbers=("NCHW", "OIHW", "NCHW"),
        ) + bias[None, :, None, None]

    conv = jax.jit(identity_conv)

    # Small case matching the PyTorch test: batch=2, 3x16x16 (lane-folded path).
    x = jax.random.normal(kx, (2, 3, 16, 16), jnp.float32)
    out = jax.block_until_ready(conv(x, weight, bias))
    assert out.shape == (2, 3, 14, 14)
    assert jnp.allclose(out, ref_conv(x), atol=1e-5, rtol=1e-5)

    # Larger batch exercising the lane-dense batch-blocked path
    # (nb=256, 2 parallel grid steps, padded batch 260 -> 512).
    x_big = jax.random.normal(kx2, (260, 3, 16, 16), jnp.float32)
    out_big = jax.block_until_ready(conv(x_big, weight, bias))
    assert out_big.shape == (260, 3, 14, 14)
    assert jnp.allclose(out_big, ref_conv(x_big), atol=1e-5, rtol=1e-5)

    print("KERNEL_OK")
</pallas_src>

<mosaic_0001>
module attributes {stable_mosaic.version = 11 : i64} {
  func.func @_conv_kernel_small(%arg0: i32, %arg1: memref<3x16x32xf32, #tpu.memory_space<vmem>>, %arg2: memref<81xf32, #tpu.memory_space<smem>>, %arg3: memref<3xf32, #tpu.memory_space<smem>>, %arg4: memref<3x14x28xf32, #tpu.memory_space<vmem>>) attributes {dimension_semantics = [#tpu.dimension_semantics<arbitrary>], iteration_bounds = array<i64: 1>, scalar_prefetch = 0 : i64, scratch_operands = 0 : i64, tpu.core_type = #tpu.core_type<tc>, window_params = [{pipeline_mode = #tpu.pipeline_mode<synchronous>, transform_indices = @transform_0, window_bounds = array<i64: 3, 16, 32>}, {transform_indices = @transform_1, window_bounds = array<i64: 81>}, {transform_indices = @transform_2, window_bounds = array<i64: 3>}, {pipeline_mode = #tpu.pipeline_mode<synchronous>, transform_indices = @transform_3, window_bounds = array<i64: 3, 14, 28>}]} {
    %c0 = arith.constant 0 : index
    %0 = memref.load %arg2[%c0] : memref<81xf32, #tpu.memory_space<smem>>
    %c1 = arith.constant 1 : index
    %1 = memref.load %arg2[%c1] : memref<81xf32, #tpu.memory_space<smem>>
    %c2 = arith.constant 2 : index
    %2 = memref.load %arg2[%c2] : memref<81xf32, #tpu.memory_space<smem>>
    %c3 = arith.constant 3 : index
    %3 = memref.load %arg2[%c3] : memref<81xf32, #tpu.memory_space<smem>>
    %c4 = arith.constant 4 : index
    %4 = memref.load %arg2[%c4] : memref<81xf32, #tpu.memory_space<smem>>
    %c5 = arith.constant 5 : index
    %5 = memref.load %arg2[%c5] : memref<81xf32, #tpu.memory_space<smem>>
    %c6 = arith.constant 6 : index
    %6 = memref.load %arg2[%c6] : memref<81xf32, #tpu.memory_space<smem>>
    %c7 = arith.constant 7 : index
    %7 = memref.load %arg2[%c7] : memref<81xf32, #tpu.memory_space<smem>>
    %c8 = arith.constant 8 : index
    %8 = memref.load %arg2[%c8] : memref<81xf32, #tpu.memory_space<smem>>
    %c9 = arith.constant 9 : index
    %9 = memref.load %arg2[%c9] : memref<81xf32, #tpu.memory_space<smem>>
    %c10 = arith.constant 10 : index
    %10 = memref.load %arg2[%c10] : memref<81xf32, #tpu.memory_space<smem>>
    %c11 = arith.constant 11 : index
    %11 = memref.load %arg2[%c11] : memref<81xf32, #tpu.memory_space<smem>>
    %c12 = arith.constant 12 : index
    %12 = memref.load %arg2[%c12] : memref<81xf32, #tpu.memory_space<smem>>
    %c13 = arith.constant 13 : index
    %13 = memref.load %arg2[%c13] : memref<81xf32, #tpu.memory_space<smem>>
    %c14 = arith.constant 14 : index
    %14 = memref.load %arg2[%c14] : memref<81xf32, #tpu.memory_space<smem>>
    %c15 = arith.constant 15 : index
    %15 = memref.load %arg2[%c15] : memref<81xf32, #tpu.memory_space<smem>>
    %c16 = arith.constant 16 : index
    %16 = memref.load %arg2[%c16] : memref<81xf32, #tpu.memory_space<smem>>
    %c17 = arith.constant 17 : index
    %17 = memref.load %arg2[%c17] : memref<81xf32, #tpu.memory_space<smem>>
    %c18 = arith.constant 18 : index
    %18 = memref.load %arg2[%c18] : memref<81xf32, #tpu.memory_space<smem>>
    %c19 = arith.constant 19 : index
    %19 = memref.load %arg2[%c19] : memref<81xf32, #tpu.memory_space<smem>>
    %c20 = arith.constant 20 : index
    %20 = memref.load %arg2[%c20] : memref<81xf32, #tpu.memory_space<smem>>
    %c21 = arith.constant 21 : index
    %21 = memref.load %arg2[%c21] : memref<81xf32, #tpu.memory_space<smem>>
    %c22 = arith.constant 22 : index
    %22 = memref.load %arg2[%c22] : memref<81xf32, #tpu.memory_space<smem>>
    %c23 = arith.constant 23 : index
    %23 = memref.load %arg2[%c23] : memref<81xf32, #tpu.memory_space<smem>>
    %c24 = arith.constant 24 : index
    %24 = memref.load %arg2[%c24] : memref<81xf32, #tpu.memory_space<smem>>
    %c25 = arith.constant 25 : index
    %25 = memref.load %arg2[%c25] : memref<81xf32, #tpu.memory_space<smem>>
    %c26 = arith.constant 26 : index
    %26 = memref.load %arg2[%c26] : memref<81xf32, #tpu.memory_space<smem>>
    %c27 = arith.constant 27 : index
    %27 = memref.load %arg2[%c27] : memref<81xf32, #tpu.memory_space<smem>>
    %c28 = arith.constant 28 : index
    %28 = memref.load %arg2[%c28] : memref<81xf32, #tpu.memory_space<smem>>
    %c29 = arith.constant 29 : index
    %29 = memref.load %arg2[%c29] : memref<81xf32, #tpu.memory_space<smem>>
    %c30 = arith.constant 30 : index
    %30 = memref.load %arg2[%c30] : memref<81xf32, #tpu.memory_space<smem>>
    %c31 = arith.constant 31 : index
    %31 = memref.load %arg2[%c31] : memref<81xf32, #tpu.memory_space<smem>>
    %c32 = arith.constant 32 : index
    %32 = memref.load %arg2[%c32] : memref<81xf32, #tpu.memory_space<smem>>
    %c33 = arith.constant 33 : index
    %33 = memref.load %arg2[%c33] : memref<81xf32, #tpu.memory_space<smem>>
    %c34 = arith.constant 34 : index
    %34 = memref.load %arg2[%c34] : memref<81xf32, #tpu.memory_space<smem>>
    %c35 = arith.constant 35 : index
    %35 = memref.load %arg2[%c35] : memref<81xf32, #tpu.memory_space<smem>>
    %c36 = arith.constant 36 : index
    %36 = memref.load %arg2[%c36] : memref<81xf32, #tpu.memory_space<smem>>
    %c37 = arith.constant 37 : index
    %37 = memref.load %arg2[%c37] : memref<81xf32, #tpu.memory_space<smem>>
    %c38 = arith.constant 38 : index
    %38 = memref.load %arg2[%c38] : memref<81xf32, #tpu.memory_space<smem>>
    %c39 = arith.constant 39 : index
    %39 = memref.load %arg2[%c39] : memref<81xf32, #tpu.memory_space<smem>>
    %c40 = arith.constant 40 : index
    %40 = memref.load %arg2[%c40] : memref<81xf32, #tpu.memory_space<smem>>
    %c41 = arith.constant 41 : index
    %41 = memref.load %arg2[%c41] : memref<81xf32, #tpu.memory_space<smem>>
    %c42 = arith.constant 42 : index
    %42 = memref.load %arg2[%c42] : memref<81xf32, #tpu.memory_space<smem>>
    %c43 = arith.constant 43 : index
    %43 = memref.load %arg2[%c43] : memref<81xf32, #tpu.memory_space<smem>>
    %c44 = arith.constant 44 : index
    %44 = memref.load %arg2[%c44] : memref<81xf32, #tpu.memory_space<smem>>
    %c45 = arith.constant 45 : index
    %45 = memref.load %arg2[%c45] : memref<81xf32, #tpu.memory_space<smem>>
    %c46 = arith.constant 46 : index
    %46 = memref.load %arg2[%c46] : memref<81xf32, #tpu.memory_space<smem>>
    %c47 = arith.constant 47 : index
    %47 = memref.load %arg2[%c47] : memref<81xf32, #tpu.memory_space<smem>>
    %c48 = arith.constant 48 : index
    %48 = memref.load %arg2[%c48] : memref<81xf32, #tpu.memory_space<smem>>
    %c49 = arith.constant 49 : index
    %49 = memref.load %arg2[%c49] : memref<81xf32, #tpu.memory_space<smem>>
    %c50 = arith.constant 50 : index
    %50 = memref.load %arg2[%c50] : memref<81xf32, #tpu.memory_space<smem>>
    %c51 = arith.constant 51 : index
    %51 = memref.load %arg2[%c51] : memref<81xf32, #tpu.memory_space<smem>>
    %c52 = arith.constant 52 : index
    %52 = memref.load %arg2[%c52] : memref<81xf32, #tpu.memory_space<smem>>
    %c53 = arith.constant 53 : index
    %53 = memref.load %arg2[%c53] : memref<81xf32, #tpu.memory_space<smem>>
    %c54 = arith.constant 54 : index
    %54 = memref.load %arg2[%c54] : memref<81xf32, #tpu.memory_space<smem>>
    %c55 = arith.constant 55 : index
    %55 = memref.load %arg2[%c55] : memref<81xf32, #tpu.memory_space<smem>>
    %c56 = arith.constant 56 : index
    %56 = memref.load %arg2[%c56] : memref<81xf32, #tpu.memory_space<smem>>
    %c57 = arith.constant 57 : index
    %57 = memref.load %arg2[%c57] : memref<81xf32, #tpu.memory_space<smem>>
    %c58 = arith.constant 58 : index
    %58 = memref.load %arg2[%c58] : memref<81xf32, #tpu.memory_space<smem>>
    %c59 = arith.constant 59 : index
    %59 = memref.load %arg2[%c59] : memref<81xf32, #tpu.memory_space<smem>>
    %c60 = arith.constant 60 : index
    %60 = memref.load %arg2[%c60] : memref<81xf32, #tpu.memory_space<smem>>
    %c61 = arith.constant 61 : index
    %61 = memref.load %arg2[%c61] : memref<81xf32, #tpu.memory_space<smem>>
    %c62 = arith.constant 62 : index
    %62 = memref.load %arg2[%c62] : memref<81xf32, #tpu.memory_space<smem>>
    %c63 = arith.constant 63 : index
    %63 = memref.load %arg2[%c63] : memref<81xf32, #tpu.memory_space<smem>>
    %c64 = arith.constant 64 : index
    %64 = memref.load %arg2[%c64] : memref<81xf32, #tpu.memory_space<smem>>
    %c65 = arith.constant 65 : index
    %65 = memref.load %arg2[%c65] : memref<81xf32, #tpu.memory_space<smem>>
    %c66 = arith.constant 66 : index
    %66 = memref.load %arg2[%c66] : memref<81xf32, #tpu.memory_space<smem>>
    %c67 = arith.constant 67 : index
    %67 = memref.load %arg2[%c67] : memref<81xf32, #tpu.memory_space<smem>>
    %c68 = arith.constant 68 : index
    %68 = memref.load %arg2[%c68] : memref<81xf32, #tpu.memory_space<smem>>
    %c69 = arith.constant 69 : index
    %69 = memref.load %arg2[%c69] : memref<81xf32, #tpu.memory_space<smem>>
    %c70 = arith.constant 70 : index
    %70 = memref.load %arg2[%c70] : memref<81xf32, #tpu.memory_space<smem>>
    %c71 = arith.constant 71 : index
    %71 = memref.load %arg2[%c71] : memref<81xf32, #tpu.memory_space<smem>>
    %c72 = arith.constant 72 : index
    %72 = memref.load %arg2[%c72] : memref<81xf32, #tpu.memory_space<smem>>
    %c73 = arith.constant 73 : index
    %73 = memref.load %arg2[%c73] : memref<81xf32, #tpu.memory_space<smem>>
    %c74 = arith.constant 74 : index
    %74 = memref.load %arg2[%c74] : memref<81xf32, #tpu.memory_space<smem>>
    %c75 = arith.constant 75 : index
    %75 = memref.load %arg2[%c75] : memref<81xf32, #tpu.memory_space<smem>>
    %c76 = arith.constant 76 : index
    %76 = memref.load %arg2[%c76] : memref<81xf32, #tpu.memory_space<smem>>
    %c77 = arith.constant 77 : index
    %77 = memref.load %arg2[%c77] : memref<81xf32, #tpu.memory_space<smem>>
    %c78 = arith.constant 78 : index
    %78 = memref.load %arg2[%c78] : memref<81xf32, #tpu.memory_space<smem>>
    %c79 = arith.constant 79 : index
    %79 = memref.load %arg2[%c79] : memref<81xf32, #tpu.memory_space<smem>>
    %c80 = arith.constant 80 : index
    %80 = memref.load %arg2[%c80] : memref<81xf32, #tpu.memory_space<smem>>
    %c0_0 = arith.constant 0 : index
    %81 = memref.load %arg3[%c0_0] : memref<3xf32, #tpu.memory_space<smem>>
    %c1_1 = arith.constant 1 : index
    %82 = memref.load %arg3[%c1_1] : memref<3xf32, #tpu.memory_space<smem>>
    %c2_2 = arith.constant 2 : index
    %83 = memref.load %arg3[%c2_2] : memref<3xf32, #tpu.memory_space<smem>>
    %c0_3 = arith.constant 0 : index
    %c0_4 = arith.constant 0 : index
    %c0_5 = arith.constant 0 : index
    %84 = vector.load %arg1[%c0_3, %c0_4, %c0_5] : memref<3x16x32xf32, #tpu.memory_space<vmem>>, vector<3x16x32xf32>
    %85 = vector.broadcast %81 : f32 to vector<14x28xf32>
    %86 = vector.broadcast %82 : f32 to vector<14x28xf32>
    %87 = vector.broadcast %83 : f32 to vector<14x28xf32>
    %88 = vector.extract_strided_slice %84 {offsets = [0, 0, 0], sizes = [1, 14, 28], strides = [1, 1, 1]} : vector<3x16x32xf32> to vector<1x14x28xf32>
    %89 = vector.shape_cast %88 : vector<1x14x28xf32> to vector<14x28xf32>
    %90 = vector.broadcast %0 : f32 to vector<14x28xf32>
    %91 = arith.mulf %89, %90 : vector<14x28xf32>
    %92 = arith.addf %85, %91 : vector<14x28xf32>
    %93 = vector.broadcast %27 : f32 to vector<14x28xf32>
    %94 = arith.mulf %89, %93 : vector<14x28xf32>
    %95 = arith.addf %86, %94 : vector<14x28xf32>
    %96 = vector.broadcast %54 : f32 to vector<14x28xf32>
    %97 = arith.mulf %89, %96 : vector<14x28xf32>
    %98 = arith.addf %87, %97 : vector<14x28xf32>
    %99 = vector.extract_strided_slice %84 {offsets = [0, 0, 2], sizes = [1, 14, 28], strides = [1, 1, 1]} : vector<3x16x32xf32> to vector<1x14x28xf32>
    %100 = vector.shape_cast %99 : vector<1x14x28xf32> to vector<14x28xf32>
    %101 = vector.broadcast %1 : f32 to vector<14x28xf32>
    %102 = arith.mulf %100, %101 : vector<14x28xf32>
    %103 = arith.addf %92, %102 : vector<14x28xf32>
    %104 = vector.broadcast %28 : f32 to vector<14x28xf32>
    %105 = arith.mulf %100, %104 : vector<14x28xf32>
    %106 = arith.addf %95, %105 : vector<14x28xf32>
    %107 = vector.broadcast %55 : f32 to vector<14x28xf32>
    %108 = arith.mulf %100, %107 : vector<14x28xf32>
    %109 = arith.addf %98, %108 : vector<14x28xf32>
    %110 = vector.extract_strided_slice %84 {offsets = [0, 0, 4], sizes = [1, 14, 28], strides = [1, 1, 1]} : vector<3x16x32xf32> to vector<1x14x28xf32>
    %111 = vector.shape_cast %110 : vector<1x14x28xf32> to vector<14x28xf32>
    %112 = vector.broadcast %2 : f32 to vector<14x28xf32>
    %113 = arith.mulf %111, %112 : vector<14x28xf32>
    %114 = arith.addf %103, %113 : vector<14x28xf32>
    %115 = vector.broadcast %29 : f32 to vector<14x28xf32>
    %116 = arith.mulf %111, %115 : vector<14x28xf32>
    %117 = arith.addf %106, %116 : vector<14x28xf32>
    %118 = vector.broadcast %56 : f32 to vector<14x28xf32>
    %119 = arith.mulf %111, %118 : vector<14x28xf32>
    %120 = arith.addf %109, %119 : vector<14x28xf32>
    %121 = vector.extract_strided_slice %84 {offsets = [0, 1, 0], sizes = [1, 14, 28], strides = [1, 1, 1]} : vector<3x16x32xf32> to vector<1x14x28xf32>
    %122 = vector.shape_cast %121 : vector<1x14x28xf32> to vector<14x28xf32>
    %123 = vector.broadcast %3 : f32 to vector<14x28xf32>
    %124 = arith.mulf %122, %123 : vector<14x28xf32>
    %125 = arith.addf %114, %124 : vector<14x28xf32>
    %126 = vector.broadcast %30 : f32 to vector<14x28xf32>
    %127 = arith.mulf %122, %126 : vector<14x28xf32>
    %128 = arith.addf %117, %127 : vector<14x28xf32>
    %129 = vector.broadcast %57 : f32 to vector<14x28xf32>
    %130 = arith.mulf %122, %129 : vector<14x28xf32>
    %131 = arith.addf %120, %130 : vector<14x28xf32>
    %132 = vector.extract_strided_slice %84 {offsets = [0, 1, 2], sizes = [1, 14, 28], strides = [1, 1, 1]} : vector<3x16x32xf32> to vector<1x14x28xf32>
    %133 = vector.shape_cast %132 : vector<1x14x28xf32> to vector<14x28xf32>
    %134 = vector.broadcast %4 : f32 to vector<14x28xf32>
    %135 = arith.mulf %133, %134 : vector<14x28xf32>
    %136 = arith.addf %125, %135 : vector<14x28xf32>
    %137 = vector.broadcast %31 : f32 to vector<14x28xf32>
    %138 = arith.mulf %133, %137 : vector<14x28xf32>
    %139 = arith.addf %128, %138 : vector<14x28xf32>
    %140 = vector.broadcast %58 : f32 to vector<14x28xf32>
    %141 = arith.mulf %133, %140 : vector<14x28xf32>
    %142 = arith.addf %131, %141 : vector<14x28xf32>
    %143 = vector.extract_strided_slice %84 {offsets = [0, 1, 4], sizes = [1, 14, 28], strides = [1, 1, 1]} : vector<3x16x32xf32> to vector<1x14x28xf32>
    %144 = vector.shape_cast %143 : vector<1x14x28xf32> to vector<14x28xf32>
    %145 = vector.broadcast %5 : f32 to vector<14x28xf32>
    %146 = arith.mulf %144, %145 : vector<14x28xf32>
    %147 = arith.addf %136, %146 : vector<14x28xf32>
    %148 = vector.broadcast %32 : f32 to vector<14x28xf32>
    %149 = arith.mulf %144, %148 : vector<14x28xf32>
    %150 = arith.addf %139, %149 : vector<14x28xf32>
    %151 = vector.broadcast %59 : f32 to vector<14x28xf32>
    %152 = arith.mulf %144, %151 : vector<14x28xf32>
    %153 = arith.addf %142, %152 : vector<14x28xf32>
    %154 = vector.extract_strided_slice %84 {offsets = [0, 2, 0], sizes = [1, 14, 28], strides = [1, 1, 1]} : vector<3x16x32xf32> to vector<1x14x28xf32>
    %155 = vector.shape_cast %154 : vector<1x14x28xf32> to vector<14x28xf32>
    %156 = vector.broadcast %6 : f32 to vector<14x28xf32>
    %157 = arith.mulf %155, %156 : vector<14x28xf32>
    %158 = arith.addf %147, %157 : vector<14x28xf32>
    %159 = vector.broadcast %33 : f32 to vector<14x28xf32>
    %160 = arith.mulf %155, %159 : vector<14x28xf32>
    %161 = arith.addf %150, %160 : vector<14x28xf32>
    %162 = vector.broadcast %60 : f32 to vector<14x28xf32>
    %163 = arith.mulf %155, %162 : vector<14x28xf32>
    %164 = arith.addf %153, %163 : vector<14x28xf32>
    %165 = vector.extract_strided_slice %84 {offsets = [0, 2, 2], sizes = [1, 14, 28], strides = [1, 1, 1]} : vector<3x16x32xf32> to vector<1x14x28xf32>
    %166 = vector.shape_cast %165 : vector<1x14x28xf32> to vector<14x28xf32>
    %167 = vector.broadcast %7 : f32 to vector<14x28xf32>
    %168 = arith.mulf %166, %167 : vector<14x28xf32>
    %169 = arith.addf %158, %168 : vector<14x28xf32>
    %170 = vector.broadcast %34 : f32 to vector<14x28xf32>
    %171 = arith.mulf %166, %170 : vector<14x28xf32>
    %172 = arith.addf %161, %171 : vector<14x28xf32>
    %173 = vector.broadcast %61 : f32 to vector<14x28xf32>
    %174 = arith.mulf %166, %173 : vector<14x28xf32>
    %175 = arith.addf %164, %174 : vector<14x28xf32>
    %176 = vector.extract_strided_slice %84 {offsets = [0, 2, 4], sizes = [1, 14, 28], strides = [1, 1, 1]} : vector<3x16x32xf32> to vector<1x14x28xf32>
    %177 = vector.shape_cast %176 : vector<1x14x28xf32> to vector<14x28xf32>
    %178 = vector.broadcast %8 : f32 to vector<14x28xf32>
    %179 = arith.mulf %177, %178 : vector<14x28xf32>
    %180 = arith.addf %169, %179 : vector<14x28xf32>
    %181 = vector.broadcast %35 : f32 to vector<14x28xf32>
    %182 = arith.mulf %177, %181 : vector<14x28xf32>
    %183 = arith.addf %172, %182 : vector<14x28xf32>
    %184 = vector.broadcast %62 : f32 to vector<14x28xf32>
    %185 = arith.mulf %177, %184 : vector<14x28xf32>
    %186 = arith.addf %175, %185 : vector<14x28xf32>
    %187 = vector.extract_strided_slice %84 {offsets = [1, 0, 0], sizes = [1, 14, 28], strides = [1, 1, 1]} : vector<3x16x32xf32> to vector<1x14x28xf32>
    %188 = vector.shape_cast %187 : vector<1x14x28xf32> to vector<14x28xf32>
    %189 = vector.broadcast %9 : f32 to vector<14x28xf32>
    %190 = arith.mulf %188, %189 : vector<14x28xf32>
    %191 = arith.addf %180, %190 : vector<14x28xf32>
    %192 = vector.broadcast %36 : f32 to vector<14x28xf32>
    %193 = arith.mulf %188, %192 : vector<14x28xf32>
    %194 = arith.addf %183, %193 : vector<14x28xf32>
    %195 = vector.broadcast %63 : f32 to vector<14x28xf32>
    %196 = arith.mulf %188, %195 : vector<14x28xf32>
    %197 = arith.addf %186, %196 : vector<14x28xf32>
    %198 = vector.extract_strided_slice %84 {offsets = [1, 0, 2], sizes = [1, 14, 28], strides = [1, 1, 1]} : vector<3x16x32xf32> to vector<1x14x28xf32>
    %199 = vector.shape_cast %198 : vector<1x14x28xf32> to vector<14x28xf32>
    %200 = vector.broadcast %10 : f32 to vector<14x28xf32>
    %201 = arith.mulf %199, %200 : vector<14x28xf32>
    %202 = arith.addf %191, %201 : vector<14x28xf32>
    %203 = vector.broadcast %37 : f32 to vector<14x28xf32>
    %204 = arith.mulf %199, %203 : vector<14x28xf32>
    %205 = arith.addf %194, %204 : vector<14x28xf32>
    %206 = vector.broadcast %64 : f32 to vector<14x28xf32>
    %207 = arith.mulf %199, %206 : vector<14x28xf32>
    %208 = arith.addf %197, %207 : vector<14x28xf32>
    %209 = vector.extract_strided_slice %84 {offsets = [1, 0, 4], sizes = [1, 14, 28], strides = [1, 1, 1]} : vector<3x16x32xf32> to vector<1x14x28xf32>
    %210 = vector.shape_cast %209 : vector<1x14x28xf32> to vector<14x28xf32>
    %211 = vector.broadcast %11 : f32 to vector<14x28xf32>
    %212 = arith.mulf %210, %211 : vector<14x28xf32>
    %213 = arith.addf %202, %212 : vector<14x28xf32>
    %214 = vector.broadcast %38 : f32 to vector<14x28xf32>
    %215 = arith.mulf %210, %214 : vector<14x28xf32>
    %216 = arith.addf %205, %215 : vector<14x28xf32>
    %217 = vector.broadcast %65 : f32 to vector<14x28xf32>
    %218 = arith.mulf %210, %217 : vector<14x28xf32>
    %219 = arith.addf %208, %218 : vector<14x28xf32>
    %220 = vector.extract_strided_slice %84 {offsets = [1, 1, 0], sizes = [1, 14, 28], strides = [1, 1, 1]} : vector<3x16x32xf32> to vector<1x14x28xf32>
    %221 = vector.shape_cast %220 : vector<1x14x28xf32> to vector<14x28xf32>
    %222 = vector.broadcast %12 : f32 to vector<14x28xf32>
    %223 = arith.mulf %221, %222 : vector<14x28xf32>
    %224 = arith.addf %213, %223 : vector<14x28xf32>
    %225 = vector.broadcast %39 : f32 to vector<14x28xf32>
    %226 = arith.mulf %221, %225 : vector<14x28xf32>
    %227 = arith.addf %216, %226 : vector<14x28xf32>
    %228 = vector.broadcast %66 : f32 to vector<14x28xf32>
    %229 = arith.mulf %221, %228 : vector<14x28xf32>
    %230 = arith.addf %219, %229 : vector<14x28xf32>
    %231 = vector.extract_strided_slice %84 {offsets = [1, 1, 2], sizes = [1, 14, 28], strides = [1, 1, 1]} : vector<3x16x32xf32> to vector<1x14x28xf32>
    %232 = vector.shape_cast %231 : vector<1x14x28xf32> to vector<14x28xf32>
    %233 = vector.broadcast %13 : f32 to vector<14x28xf32>
    %234 = arith.mulf %232, %233 : vector<14x28xf32>
    %235 = arith.addf %224, %234 : vector<14x28xf32>
    %236 = vector.broadcast %40 : f32 to vector<14x28xf32>
    %237 = arith.mulf %232, %236 : vector<14x28xf32>
    %238 = arith.addf %227, %237 : vector<14x28xf32>
    %239 = vector.broadcast %67 : f32 to vector<14x28xf32>
    %240 = arith.mulf %232, %239 : vector<14x28xf32>
    %241 = arith.addf %230, %240 : vector<14x28xf32>
    %242 = vector.extract_strided_slice %84 {offsets = [1, 1, 4], sizes = [1, 14, 28], strides = [1, 1, 1]} : vector<3x16x32xf32> to vector<1x14x28xf32>
    %243 = vector.shape_cast %242 : vector<1x14x28xf32> to vector<14x28xf32>
    %244 = vector.broadcast %14 : f32 to vector<14x28xf32>
    %245 = arith.mulf %243, %244 : vector<14x28xf32>
    %246 = arith.addf %235, %245 : vector<14x28xf32>
    %247 = vector.broadcast %41 : f32 to vector<14x28xf32>
    %248 = arith.mulf %243, %247 : vector<14x28xf32>
    %249 = arith.addf %238, %248 : vector<14x28xf32>
    %250 = vector.broadcast %68 : f32 to vector<14x28xf32>
    %251 = arith.mulf %243, %250 : vector<14x28xf32>
    %252 = arith.addf %241, %251 : vector<14x28xf32>
    %253 = vector.extract_strided_slice %84 {offsets = [1, 2, 0], sizes = [1, 14, 28], strides = [1, 1, 1]} : vector<3x16x32xf32> to vector<1x14x28xf32>
    %254 = vector.shape_cast %253 : vector<1x14x28xf32> to vector<14x28xf32>
    %255 = vector.broadcast %15 : f32 to vector<14x28xf32>
    %256 = arith.mulf %254, %255 : vector<14x28xf32>
    %257 = arith.addf %246, %256 : vector<14x28xf32>
    %258 = vector.broadcast %42 : f32 to vector<14x28xf32>
    %259 = arith.mulf %254, %258 : vector<14x28xf32>
    %260 = arith.addf %249, %259 : vector<14x28xf32>
    %261 = vector.broadcast %69 : f32 to vector<14x28xf32>
    %262 = arith.mulf %254, %261 : vector<14x28xf32>
    %263 = arith.addf %252, %262 : vector<14x28xf32>
    %264 = vector.extract_strided_slice %84 {offsets = [1, 2, 2], sizes = [1, 14, 28], strides = [1, 1, 1]} : vector<3x16x32xf32> to vector<1x14x28xf32>
    %265 = vector.shape_cast %264 : vector<1x14x28xf32> to vector<14x28xf32>
    %266 = vector.broadcast %16 : f32 to vector<14x28xf32>
    %267 = arith.mulf %265, %266 : vector<14x28xf32>
    %268 = arith.addf %257, %267 : vector<14x28xf32>
    %269 = vector.broadcast %43 : f32 to vector<14x28xf32>
    %270 = arith.mulf %265, %269 : vector<14x28xf32>
    %271 = arith.addf %260, %270 : vector<14x28xf32>
    %272 = vector.broadcast %70 : f32 to vector<14x28xf32>
    %273 = arith.mulf %265, %272 : vector<14x28xf32>
    %274 = arith.addf %263, %273 : vector<14x28xf32>
    %275 = vector.extract_strided_slice %84 {offsets = [1, 2, 4], sizes = [1, 14, 28], strides = [1, 1, 1]} : vector<3x16x32xf32> to vector<1x14x28xf32>
    %276 = vector.shape_cast %275 : vector<1x14x28xf32> to vector<14x28xf32>
    %277 = vector.broadcast %17 : f32 to vector<14x28xf32>
    %278 = arith.mulf %276, %277 : vector<14x28xf32>
    %279 = arith.addf %268, %278 : vector<14x28xf32>
    %280 = vector.broadcast %44 : f32 to vector<14x28xf32>
    %281 = arith.mulf %276, %280 : vector<14x28xf32>
    %282 = arith.addf %271, %281 : vector<14x28xf32>
    %283 = vector.broadcast %71 : f32 to vector<14x28xf32>
    %284 = arith.mulf %276, %283 : vector<14x28xf32>
    %285 = arith.addf %274, %284 : vector<14x28xf32>
    %286 = vector.extract_strided_slice %84 {offsets = [2, 0, 0], sizes = [1, 14, 28], strides = [1, 1, 1]} : vector<3x16x32xf32> to vector<1x14x28xf32>
    %287 = vector.shape_cast %286 : vector<1x14x28xf32> to vector<14x28xf32>
    %288 = vector.broadcast %18 : f32 to vector<14x28xf32>
    %289 = arith.mulf %287, %288 : vector<14x28xf32>
    %290 = arith.addf %279, %289 : vector<14x28xf32>
    %291 = vector.broadcast %45 : f32 to vector<14x28xf32>
    %292 = arith.mulf %287, %291 : vector<14x28xf32>
    %293 = arith.addf %282, %292 : vector<14x28xf32>
    %294 = vector.broadcast %72 : f32 to vector<14x28xf32>
    %295 = arith.mulf %287, %294 : vector<14x28xf32>
    %296 = arith.addf %285, %295 : vector<14x28xf32>
    %297 = vector.extract_strided_slice %84 {offsets = [2, 0, 2], sizes = [1, 14, 28], strides = [1, 1, 1]} : vector<3x16x32xf32> to vector<1x14x28xf32>
    %298 = vector.shape_cast %297 : vector<1x14x28xf32> to vector<14x28xf32>
    %299 = vector.broadcast %19 : f32 to vector<14x28xf32>
    %300 = arith.mulf %298, %299 : vector<14x28xf32>
    %301 = arith.addf %290, %300 : vector<14x28xf32>
    %302 = vector.broadcast %46 : f32 to vector<14x28xf32>
    %303 = arith.mulf %298, %302 : vector<14x28xf32>
    %304 = arith.addf %293, %303 : vector<14x28xf32>
    %305 = vector.broadcast %73 : f32 to vector<14x28xf32>
    %306 = arith.mulf %298, %305 : vector<14x28xf32>
    %307 = arith.addf %296, %306 : vector<14x28xf32>
    %308 = vector.extract_strided_slice %84 {offsets = [2, 0, 4], sizes = [1, 14, 28], strides = [1, 1, 1]} : vector<3x16x32xf32> to vector<1x14x28xf32>
    %309 = vector.shape_cast %308 : vector<1x14x28xf32> to vector<14x28xf32>
    %310 = vector.broadcast %20 : f32 to vector<14x28xf32>
    %311 = arith.mulf %309, %310 : vector<14x28xf32>
    %312 = arith.addf %301, %311 : vector<14x28xf32>
    %313 = vector.broadcast %47 : f32 to vector<14x28xf32>
    %314 = arith.mulf %309, %313 : vector<14x28xf32>
    %315 = arith.addf %304, %314 : vector<14x28xf32>
    %316 = vector.broadcast %74 : f32 to vector<14x28xf32>
    %317 = arith.mulf %309, %316 : vector<14x28xf32>
    %318 = arith.addf %307, %317 : vector<14x28xf32>
    %319 = vector.extract_strided_slice %84 {offsets = [2, 1, 0], sizes = [1, 14, 28], strides = [1, 1, 1]} : vector<3x16x32xf32> to vector<1x14x28xf32>
    %320 = vector.shape_cast %319 : vector<1x14x28xf32> to vector<14x28xf32>
    %321 = vector.broadcast %21 : f32 to vector<14x28xf32>
    %322 = arith.mulf %320, %321 : vector<14x28xf32>
    %323 = arith.addf %312, %322 : vector<14x28xf32>
    %324 = vector.broadcast %48 : f32 to vector<14x28xf32>
    %325 = arith.mulf %320, %324 : vector<14x28xf32>
    %326 = arith.addf %315, %325 : vector<14x28xf32>
    %327 = vector.broadcast %75 : f32 to vector<14x28xf32>
    %328 = arith.mulf %320, %327 : vector<14x28xf32>
    %329 = arith.addf %318, %328 : vector<14x28xf32>
    %330 = vector.extract_strided_slice %84 {offsets = [2, 1, 2], sizes = [1, 14, 28], strides = [1, 1, 1]} : vector<3x16x32xf32> to vector<1x14x28xf32>
    %331 = vector.shape_cast %330 : vector<1x14x28xf32> to vector<14x28xf32>
    %332 = vector.broadcast %22 : f32 to vector<14x28xf32>
    %333 = arith.mulf %331, %332 : vector<14x28xf32>
    %334 = arith.addf %323, %333 : vector<14x28xf32>
    %335 = vector.broadcast %49 : f32 to vector<14x28xf32>
    %336 = arith.mulf %331, %335 : vector<14x28xf32>
    %337 = arith.addf %326, %336 : vector<14x28xf32>
    %338 = vector.broadcast %76 : f32 to vector<14x28xf32>
    %339 = arith.mulf %331, %338 : vector<14x28xf32>
    %340 = arith.addf %329, %339 : vector<14x28xf32>
    %341 = vector.extract_strided_slice %84 {offsets = [2, 1, 4], sizes = [1, 14, 28], strides = [1, 1, 1]} : vector<3x16x32xf32> to vector<1x14x28xf32>
    %342 = vector.shape_cast %341 : vector<1x14x28xf32> to vector<14x28xf32>
    %343 = vector.broadcast %23 : f32 to vector<14x28xf32>
    %344 = arith.mulf %342, %343 : vector<14x28xf32>
    %345 = arith.addf %334, %344 : vector<14x28xf32>
    %346 = vector.broadcast %50 : f32 to vector<14x28xf32>
    %347 = arith.mulf %342, %346 : vector<14x28xf32>
    %348 = arith.addf %337, %347 : vector<14x28xf32>
    %349 = vector.broadcast %77 : f32 to vector<14x28xf32>
    %350 = arith.mulf %342, %349 : vector<14x28xf32>
    %351 = arith.addf %340, %350 : vector<14x28xf32>
    %352 = vector.extract_strided_slice %84 {offsets = [2, 2, 0], sizes = [1, 14, 28], strides = [1, 1, 1]} : vector<3x16x32xf32> to vector<1x14x28xf32>
    %353 = vector.shape_cast %352 : vector<1x14x28xf32> to vector<14x28xf32>
    %354 = vector.broadcast %24 : f32 to vector<14x28xf32>
    %355 = arith.mulf %353, %354 : vector<14x28xf32>
    %356 = arith.addf %345, %355 : vector<14x28xf32>
    %357 = vector.broadcast %51 : f32 to vector<14x28xf32>
    %358 = arith.mulf %353, %357 : vector<14x28xf32>
    %359 = arith.addf %348, %358 : vector<14x28xf32>
    %360 = vector.broadcast %78 : f32 to vector<14x28xf32>
    %361 = arith.mulf %353, %360 : vector<14x28xf32>
    %362 = arith.addf %351, %361 : vector<14x28xf32>
    %363 = vector.extract_strided_slice %84 {offsets = [2, 2, 2], sizes = [1, 14, 28], strides = [1, 1, 1]} : vector<3x16x32xf32> to vector<1x14x28xf32>
    %364 = vector.shape_cast %363 : vector<1x14x28xf32> to vector<14x28xf32>
    %365 = vector.broadcast %25 : f32 to vector<14x28xf32>
    %366 = arith.mulf %364, %365 : vector<14x28xf32>
    %367 = arith.addf %356, %366 : vector<14x28xf32>
    %368 = vector.broadcast %52 : f32 to vector<14x28xf32>
    %369 = arith.mulf %364, %368 : vector<14x28xf32>
    %370 = arith.addf %359, %369 : vector<14x28xf32>
    %371 = vector.broadcast %79 : f32 to vector<14x28xf32>
    %372 = arith.mulf %364, %371 : vector<14x28xf32>
    %373 = arith.addf %362, %372 : vector<14x28xf32>
    %374 = vector.extract_strided_slice %84 {offsets = [2, 2, 4], sizes = [1, 14, 28], strides = [1, 1, 1]} : vector<3x16x32xf32> to vector<1x14x28xf32>
    %375 = vector.shape_cast %374 : vector<1x14x28xf32> to vector<14x28xf32>
    %376 = vector.broadcast %26 : f32 to vector<14x28xf32>
    %377 = arith.mulf %375, %376 : vector<14x28xf32>
    %378 = arith.addf %367, %377 : vector<14x28xf32>
    %379 = vector.broadcast %53 : f32 to vector<14x28xf32>
    %380 = arith.mulf %375, %379 : vector<14x28xf32>
    %381 = arith.addf %370, %380 : vector<14x28xf32>
    %382 = vector.broadcast %80 : f32 to vector<14x28xf32>
    %383 = arith.mulf %375, %382 : vector<14x28xf32>
    %384 = arith.addf %373, %383 : vector<14x28xf32>
    %c0_6 = arith.constant 0 : index
    %c0_7 = arith.constant 0 : index
    %c0_8 = arith.constant 0 : index
    %385 = vector.load %arg4[%c0_6, %c0_7, %c0_8] : memref<3x14x28xf32, #tpu.memory_space<vmem>>, vector<1x14x28xf32>
    %386 = vector.shape_cast %385 : vector<1x14x28xf32> to vector<14x28xf32>
    %387 = vector.shape_cast %378 : vector<14x28xf32> to vector<1x14x28xf32>
    tpu.vector_store %arg4[%c0_6, %c0_7, %c0_8], %387 {strides = array<i32>} : memref<3x14x28xf32, #tpu.memory_space<vmem>>, vector<1x14x28xf32>,
    %c1_9 = arith.constant 1 : index
    %c0_10 = arith.constant 0 : index
    %c0_11 = arith.constant 0 : index
    %388 = vector.load %arg4[%c1_9, %c0_10, %c0_11] : memref<3x14x28xf32, #tpu.memory_space<vmem>>, vector<1x14x28xf32>
    %389 = vector.shape_cast %388 : vector<1x14x28xf32> to vector<14x28xf32>
    %390 = vector.shape_cast %381 : vector<14x28xf32> to vector<1x14x28xf32>
    tpu.vector_store %arg4[%c1_9, %c0_10, %c0_11], %390 {strides = array<i32>} : memref<3x14x28xf32, #tpu.memory_space<vmem>>, vector<1x14x28xf32>,
    %c2_12 = arith.constant 2 : index
    %c0_13 = arith.constant 0 : index
    %c0_14 = arith.constant 0 : index
    %391 = vector.load %arg4[%c2_12, %c0_13, %c0_14] : memref<3x14x28xf32, #tpu.memory_space<vmem>>, vector<1x14x28xf32>
    %392 = vector.shape_cast %391 : vector<1x14x28xf32> to vector<14x28xf32>
    %393 = vector.shape_cast %384 : vector<14x28xf32> to vector<1x14x28xf32>
    tpu.vector_store %arg4[%c2_12, %c0_13, %c0_14], %393 {strides = array<i32>} : memref<3x14x28xf32, #tpu.memory_space<vmem>>, vector<1x14x28xf32>,
    return
  }
  func.func @transform_0(%arg0: i32) -> (i32, i32, i32) {
    %c0_i32 = arith.constant 0 : i32
    %c0_i32_0 = arith.constant 0 : i32
    %c0_i32_1 = arith.constant 0 : i32
    %c0_i32_2 = arith.constant 0 : i32
    return %c0_i32, %c0_i32_0, %c0_i32_1 : i32, i32, i32
  }
  func.func @transform_1(%arg0: i32) -> i32 {
    %c0_i32 = arith.constant 0 : i32
    %c0_i32_0 = arith.constant 0 : i32
    return %c0_i32 : i32
  }
  func.func @transform_2(%arg0: i32) -> i32 {
    %c0_i32 = arith.constant 0 : i32
    %c0_i32_0 = arith.constant 0 : i32
    return %c0_i32 : i32
  }
  func.func @transform_3(%arg0: i32) -> (i32, i32, i32) {
    %c0_i32 = arith.constant 0 : i32
    %c0_i32_0 = arith.constant 0 : i32
    %c0_i32_1 = arith.constant 0 : i32
    %c0_i32_2 = arith.constant 0 : i32
    return %c0_i32, %c0_i32_0, %c0_i32_1 : i32, i32, i32
  }
}

</mosaic_0001>

<bundles_post_ra>
// kernel: identity_conv.1
= control target key start
LH: loop header
LB: loop body
LE: loop exit
PB: predicated region body
PF: predicated region fallthrough
CT: control target
= control target key end

     0   :  { %8 = vsyncpa [#allocation3], 0  ;;  %s2063_s0 = inlined_call_operand.vmem [shape: f32[3,16,32], index: 0, kind: input, shape index: {}]   ;;  %s2064_s1 = inlined_call_operand.vmem [shape: f32[81], index: 1, kind: input, shape index: {}]   ;;  %s2065_s2 = inlined_call_operand.vmem [shape: f32[3], index: 2, kind: input, shape index: {}]   ;;  %s2066_s3 = inlined_call_operand.vmem [shape: f32[3,14,28], index: 3, kind: output, shape index: {}]  }
   0x1   :  { %s17_s14 = sshll.u32 %s2064_s1, 4  ;;  %s18_s14 = int_to_ptr.vmem [resolvable:$true] %s17_s14 }
   0x2   :  { %9 = vsyncpa [#allocation5], 0  ;;  %s26_s17 = sshll.u32 %s2065_s2, 4  ;;  %s1341_s18 = smov [#allocation2]   ;;  %s27_s17 = int_to_ptr.vmem [resolvable:$true] %s26_s17 }
   0x3   :  { %20 = dma.vmem_to_smem %s18_s14, 16, %s1341_s18, [#allocation3]  }
   0x4   :  { %s1342_s19 = smov [#allocation4]  }
   0x5   :  { %29 = dma.vmem_to_smem %s27_s17, 16, %s1342_s19, [#allocation5]  }
   0x6   :  { %1337 = dma.done.wait [#allocation3], 16  }
   0x7   :  { %1338 = vsyncadd [#allocation3], 4294967280 }
   0x8   :  { %1339 = dma.done.wait [#allocation5], 16  }
   0x9   :  { %1340 = vsyncadd [#allocation5], 4294967280 }
   0xa   :  { %38 = sfence }
   0xb   :  { %s1275_s20 = sld [smem:[#allocation2 + $0x37]]  ;;  %v1374_v0 = vld [vmem:[%s2063_s0] sm:$0xff]  ;;  %s1343_s2 = smov 126   ;;  %v1383_v7 = vld [vmem:[%s2063_s0 + $0x8] sm:$0xff]  ;;  %vm230_vm0 = vcmask 1046528   ;;  %vm363_vm1 = vcmask 1045504  }
   0xc   :  { %s1248_s21 = sld [smem:[#allocation2 + $0x1c]]  ;;  %s1344_s4 = smov 124   ;;  %vm1205_vm2 = vcmask 228352   ;;  %vm1207_vm3 = vcmask 226304  }
   0xd   :  { %s1221_s22 = sld [smem:[#allocation2 + $0x1]] }
   0xe   :  { %s1249_s26 = sld [smem:[#allocation2 + $0x1d]] }
   0xf   :  { %s1222_s27 = sld [smem:[#allocation2 + $0x2]] }
  0x10   :  { %s1276_s28 = sld [smem:[#allocation2 + $0x38]] }
  0x11   :  { %v173_v1 = vstv %s1275_s20  ;;  %s1251_s29 = sld [smem:[#allocation2 + $0x1f]] }
  0x12   :  { %v174_v2 = vmul.f32 %v173_v1, %v1374_v0  ;;  %v160_v3 = vstv %s1248_s21  ;;  %v175_v8 = vmul.f32 %v173_v1, %v1383_v7  ;;  %s1224_s30 = sld [smem:[#allocation2 + $0x4]] }
  0x13   :  { %v161_v4 = vmul.f32 %v160_v3, %v1374_v0  ;;  %v147_v5 = vstv %s1221_s22  ;;  %v162_v9 = vmul.f32 %v160_v3, %v1383_v7  ;;  %s1278_s5 = sld [smem:[#allocation2 + $0x3a]] }
  0x14   :  { %178 = vrot.lane.b32.xlu2 %v174_v2, %s1343_s2  ;;  %v148_v6 = vmul.f32 %v147_v5, %v1374_v0  ;;  %v149_v10 = vmul.f32 %v147_v5, %v1383_v7  ;;  %v199_v11 = vstv %s1249_s26  ;;  %s1252_s6 = sld [smem:[#allocation2 + $0x20]] }
  0x15   :  { %165 = vrot.lane.b32.xlu1 %v161_v4, %s1343_s2  ;;  %v186_v12 = vstv %s1222_s27  ;;  %v200_v13 = vmul.f32 %v199_v11, %v1374_v0  ;;  %v201_v23 = vmul.f32 %v199_v11, %v1383_v7  ;;  %s1225_s7 = sld [smem:[#allocation2 + $0x5]] }
  0x16   :  { %152 = vrot.lane.b32.xlu0 %v148_v6, %s1343_s2  ;;  %v188_v14 = vmul.f32 %v186_v12, %v1383_v7  ;;  %v187_v15 = vmul.f32 %v186_v12, %v1374_v0  ;;  %v212_v16 = vstv %s1276_s28  ;;  %s1279_s8 = sld [smem:[#allocation2 + $0x3b]] }
  0x17   :  { %v278_v17 = vstv %s1251_s29  ;;  %v214_v18 = vmul.f32 %v212_v16, %v1383_v7  ;;  %v213_v20 = vmul.f32 %v212_v16, %v1374_v0  ;;  %s1254_s9 = sld [smem:[#allocation2 + $0x22]] }
  0x18   :  { %v262_v19 = vstv %s1224_s30  ;;  %v279_v21 = vmul.f32 %v278_v17, %v1374_v0  ;;  %v280_v22 = vmul.f32 %v278_v17, %v1383_v7  ;;  %s1227_s10 = sld [smem:[#allocation2 + $0x7]] }
  0x19   :  { %v263_v24 = vmul.f32 %v262_v19, %v1374_v0  ;;  %v264_v25 = vmul.f32 %v262_v19, %v1383_v7  ;;  %v294_v30 = vstv %s1278_s5  ;;  %s1281_s11 = sld [smem:[#allocation2 + $0x3d]] }
  0x1a   :  { %v283_v26 = vrot.slane %v279_v21, 1  ;;  %v284_v27 = vrot.slane %v280_v22, 1  ;;  %v295_v32 = vmul.f32 %v294_v30, %v1374_v0  ;;  %v296_v33 = vmul.f32 %v294_v30, %v1383_v7  ;;  %s1255_s12 = sld [smem:[#allocation2 + $0x23]]  ;;  %v1469_v30 = vld [vmem:[%s2063_s0 + $0x10] sm:$0xff] }
  0x1b   :  { %v268_v28 = vrot.slane %v264_v25, 1  ;;  %v267_v29 = vrot.slane %v263_v24, 1  ;;  %v326_v37 = vstv %s1252_s6  ;;  %v310_v38 = vstv %s1225_s7  ;;  %s1228_s13 = sld [smem:[#allocation2 + $0x8]] }
  0x1c   :  { %180 = vrot.lane.b32.xlu2 %v175_v8, %s1343_s2  ;;  %v285_v31 = vsel %vm230_vm0, %v283_v26, %v284_v27  ;;  %v300_v35 = vrot.slane %v296_v33, 1  ;;  %v299_v36 = vrot.slane %v295_v32, 1  ;;  %v327_v39 = vmul.f32 %v326_v37, %v1374_v0  ;;  %s1282_s14 = sld [smem:[#allocation2 + $0x3e]]  ;;  %v1478_v33 = vld [vmem:[%s2063_s0 + $0x18] sm:$0xff] }
  0x1d   :  { %167 = vrot.lane.b32.xlu1 %v162_v9, %s1343_s2  ;;  %v269_v34 = vsel %vm230_vm0, %v267_v29, %v268_v28  ;;  %v328_v40 = vmul.f32 %v326_v37, %v1383_v7  ;;  %v311_v42 = vmul.f32 %v310_v38, %v1374_v0  ;;  %v312_v43 = vmul.f32 %v310_v38, %v1383_v7  ;;  %s1460_s15 = sld [smem:[#allocation2 + $0x25]] }
  0x1e   :  { %154 = vrot.lane.b32.xlu0 %v149_v10, %s1343_s2  ;;  %v301_v41 = vsel %vm230_vm0, %v299_v36, %v300_v35  ;;  %v331_v44 = vrot.slane %v327_v39, 1  ;;  %v342_v48 = vstv %s1279_s8  ;;  %v411_v55 = vstv %s1254_s9  ;;  %s1230_s16 = sld [smem:[#allocation2 + $0xa]] }
  0x1f   :  { %v332_v45 = vrot.slane %v328_v40, 1  ;;  %v316_v46 = vrot.slane %v312_v43, 1  ;;  %v315_v47 = vrot.slane %v311_v42, 1  ;;  %v343_v50 = vmul.f32 %v342_v48, %v1374_v0  ;;  %s1284_s19 = sld [smem:[#allocation2 + $0x40]] }
  0x20   :  { %v344_v51 = vmul.f32 %v342_v48, %v1383_v7  ;;  %v395_v56 = vstv %s1227_s10  ;;  %v412_v57 = vmul.f32 %v411_v55, %v1374_v0  ;;  %v413_v58 = vmul.f32 %v411_v55, %v1383_v7  ;;  %s1482_s22 = sld [smem:[#allocation2 + $0x36]] }
  0x21   :  { %v333_v49 = vsel %vm230_vm0, %v331_v44, %v332_v45  ;;  %v317_v52 = vsel %vm230_vm0, %v315_v47, %v316_v46  ;;  %v347_v54 = vrot.slane %v343_v50, 1  ;;  %v396_v60 = vmul.f32 %v395_v56, %v1374_v0  ;;  %s1485_s1 = sld [smem:[#allocation4 + $0x2]] }
  0x22   :  { %v348_v53 = vrot.slane %v344_v51, 1  ;;  %v397_v61 = vmul.f32 %v395_v56, %v1383_v7  ;;  %v416_v62 = vrot.slane %v412_v57, 2  ;;  %v417_v63 = vrot.slane %v413_v58, 2  ;;  %s1488_s23 = sld [smem:[#allocation2 + $0x26]] }
  0x23   :  { %v400_v2 = vrot.slane %v396_v60, 2  ;;  %v427_v3 = vstv %s1281_s11  ;;  %v459_v11 = vstv %s1255_s12  ;;  %v443_v12 = vstv %s1228_s13  ;;  %s1491_s24 = sld [smem:[#allocation2 + $0x1b]] }
  0x24   :  { %204 = vrot.lane.b32.xlu2 %v200_v13, %s1344_s4  ;;  %v349_v59 = vsel %vm230_vm0, %v347_v54, %v348_v53  ;;  %v401_v1 = vrot.slane %v397_v61, 2  ;;  %v418_v4 = vsel %vm363_vm1, %v416_v62, %v417_v63  ;;  %v428_v5 = vmul.f32 %v427_v3, %v1374_v0  ;;  %s1231_s25 = sld [smem:[#allocation2 + $0xb]] }
  0x25   :  { %193 = vrot.lane.b32.xlu1 %v188_v14, %s1344_s4  ;;  %v429_v6 = vmul.f32 %v427_v3, %v1383_v7  ;;  %v460_v13 = vmul.f32 %v459_v11, %v1374_v0  ;;  %v461_v14 = vmul.f32 %v459_v11, %v1383_v7  ;;  %v444_v16 = vmul.f32 %v443_v12, %v1374_v0  ;;  %s1250_s26 = sld [smem:[#allocation2 + $0x1e]] }
  0x26   :  { %191 = vrot.lane.b32.xlu0 %v187_v15, %s1344_s4  ;;  %v402_v8 = vsel %vm363_vm1, %v400_v2, %v401_v1  ;;  %v432_v10 = vrot.slane %v428_v5, 2  ;;  %v445_v17 = vmul.f32 %v443_v12, %v1383_v7  ;;  %v475_v22 = vstv %s1282_s14  ;;  %s1496_s27 = sld [smem:[#allocation4 + $0x1]] }
  0x27   :  { %v433_v9 = vrot.slane %v429_v6, 2  ;;  %v465_v19 = vrot.slane %v461_v14, 2  ;;  %v448_v21 = vrot.slane %v444_v16, 2  ;;  %v476_v24 = vmul.f32 %v475_v22, %v1374_v0  ;;  %s1507_s28 = sld [smem:[#allocation2 + $0x41]] }
  0x28   :  { %v477_v25 = vmul.f32 %v475_v22, %v1383_v7  ;;  %v532_v38 = vstv %s1284_s19  ;;  %v142_v42 = vstv %s1482_s22  ;;  %v131_v47 = vstv %s1485_s1  ;;  %s1511_s29 = sld [smem:[#allocation2 + $0x28]] }
  0x29   :  { %v434_v15 = vsel %vm363_vm1, %v432_v10, %v433_v9  ;;  %v534_v40 = vmul.f32 %v532_v38, %v1478_v33  ;;  %v144_v44 = vmul.f32 %v142_v42, %v1383_v7  ;;  %s1519_s30 = sld [smem:[#allocation2 + $0xd]] }
  0x2a   :  { %s1528_s5 = sld [smem:[#allocation2 + $0x39]] }
  0x2b   :  { %v146_v50 = vadd.f32 %v144_v44, %v131_v47  ;;  %v238_v51 = vstv %s1250_s26  ;;  %s1530_s6 = sld [smem:[#allocation2]] }
  0x2c   :  { %219 = vrot.lane.b32.xlu2 %v214_v18, %s1344_s4  ;;  %v464_v18 = vrot.slane %v460_v13, 2  ;;  %v130_v55 = vstv %s1496_s27  ;;  %v239_v57 = vmul.f32 %v238_v51, %v1374_v0  ;;  %v1526_v58 = vmul.f32 %v238_v51, %v1383_v7  ;;  %s1540_s7 = sld [smem:[#allocation2 + $0x43]] }
  0x2d   :  { %217 = vrot.lane.b32.xlu1 %v213_v20, %s1344_s4  ;;  %v449_v20 = vrot.slane %v445_v17, 2  ;;  %v571_v61 = vstv %s1507_s28  ;;  %s1542_s8 = sld [smem:[#allocation4]] }
  0x2e   :  { %206 = vrot.lane.b32.xlu0 %v201_v23, %s1344_s4  ;;  %v466_v23 = vsel %vm363_vm1, %v464_v18, %v465_v19  ;;  %v636_v2 = vstv %s1511_s29  ;;  %v572_v10 = vmul.f32 %v571_v61, %v1469_v30  ;;  %s1570_s9 = sld [smem:[#allocation2 + $0x29]] }
  0x2f   :  { %v450_v26 = vsel %vm363_vm1, %v448_v21, %v449_v20  ;;  %v637_v11 = vmul.f32 %v636_v2, %v1469_v30  ;;  %v1549_v12 = vmul.f32 %v636_v2, %v1478_v33  ;;  %s1573_s10 = sld [smem:[#allocation2 + $0xe]] }
  0x30   :  { %v250_v16 = vstv %s1528_s5  ;;  %s1578_s11 = sld [smem:[#allocation2 + $0x3]] }
  0x31   :  { %v132_v17 = vstv %s1530_s6  ;;  %v641_v21 = vrot.slane %v637_v11, 1  ;;  %v642_v22 = vrot.slane %v1549_v12, 1  ;;  %s1592_s12 = sld [smem:[#allocation2 + $0x21]] }
  0x32   :  { %s1598_s13 = sld [smem:[#allocation2 + $0x44]] }
  0x33   :  { %s1620_s14 = sld [smem:[#allocation2 + $0x2b]] }
  0x34   :  { %286 = vrot.lane.b32.xlu2 %v285_v31, %s1343_s2  ;;  %v519_v31 = vstv %s1460_s15  ;;  %s1623_s15 = sld [smem:[#allocation2 + $0x10]] }
  0x35   :  { %272 = vrot.lane.b32.xlu1 %v268_v28, %s1343_s2  ;;  %v480_v28 = vrot.slane %v476_v24, 2  ;;  %v521_v43 = vmul.f32 %v519_v31, %v1478_v33  ;;  %v133_v24 = vmul.f32 %v132_v17, %v1374_v0  ;;  %s1645_s17 = sld [smem:[#allocation2 + $0x46]] }
  0x36   :  { %270 = vrot.lane.b32.xlu0 %v269_v34, %s1343_s2  ;;  %v506_v34 = vstv %s1230_s16  ;;  %s1632_s16 = sld [smem:[#allocation2 + $0x3c]] }
  0x37   :  { %v508_v36 = vmul.f32 %v506_v34, %v1478_v33  ;;  %v507_v37 = vmul.f32 %v506_v34, %v1469_v30  ;;  %v652_v34 = vstv %s1540_s7  ;;  %s1667_s18 = sld [smem:[#allocation2 + $0x2c]] }
  0x38   :  { %s1237_s19 = sld [smem:[#allocation2 + $0x11]] }
  0x39   :  { %s1226_s20 = sld [smem:[#allocation2 + $0x6]] }
  0x3a   :  { %s1683_s21 = sld [smem:[#allocation2 + $0x47]] }
  0x3b   :  { %s1695_s22 = sld [smem:[#allocation2 + $0x24]] }
  0x3c   :  { %304 = vrot.lane.b32.xlu2 %v300_v35, %s1343_s2  ;;  %v520_v35 = vmul.f32 %v519_v31, %v1469_v30  ;;  %s1707_s1 = sld [smem:[#allocation2 + $0x3f]] }
  0x3d   :  { %302 = vrot.lane.b32.xlu1 %v301_v41, %s1343_s2  ;;  %v533_v41 = vmul.f32 %v532_v38, %v1469_v30  ;;  %s1731_s27 = sld [smem:[#allocation2 + $0x49]] }
  0x3e   :  { %288 = vrot.lane.b32.xlu0 %v284_v27, %s1343_s2  ;;  %v481_v27 = vrot.slane %v477_v25, 2  ;;  %s1754_s5 = sld [smem:[#allocation2 + $0x2f]] }
  0x3f   :  { %s1240_s6 = sld [smem:[#allocation2 + $0x14]] }
  0x40   :  { %v482_v29 = vsel %vm363_vm1, %v480_v28, %v481_v27  ;;  %s1259_s7 = sld [smem:[#allocation2 + $0x27]] }
  0x41   :  { %s1927_s29 = sld [smem:[#allocation2 + $0x2d]] }
  0x44   :  { %334 = vrot.lane.b32.xlu2 %v333_v49, %s1344_s4  ;;  %v545_v49 = vstv %s1231_s25 }
  0x45   :  { %320 = vrot.lane.b32.xlu1 %v316_v46, %s1344_s4  ;;  %v137_v46 = vstv %s1491_s24  ;;  %v547_v54 = vmul.f32 %v545_v49, %v1478_v33  ;;  %v546_v56 = vmul.f32 %v545_v49, %v1469_v30  ;;  %s1714_s24 = sld [smem:[#allocation2 + $0x13]] }
  0x46   :  { %318 = vrot.lane.b32.xlu0 %v317_v52, %s1344_s4 }
  0x4c   :  { %352 = vrot.lane.b32.xlu2 %v348_v53, %s1344_s4  ;;  %v138_v53 = vmul.f32 %v137_v46, %v1374_v0 }
  0x4d   :  { %350 = vrot.lane.b32.xlu1 %v349_v59, %s1344_s4 }
  0x4e   :  { %336 = vrot.lane.b32.xlu0 %v332_v45, %s1344_s4  ;;  %v558_v45 = vstv %s1488_s23  ;;  %v140_v60 = vadd.f32 %v138_v53, %v130_v55  ;;  %v684_v53 = vstv %s1570_s9  ;;  %s1710_s23 = sld [smem:[#allocation2 + $0x2e]] }
  0x4f   :  { %v559_v52 = vmul.f32 %v558_v45, %v1469_v30  ;;  %v560_v14 = vmul.f32 %v558_v45, %v1478_v33  ;;  %v143_v45 = vmul.f32 %v142_v42, %v1374_v0  ;;  %v139_v42 = vmul.f32 %v137_v46, %v1383_v7  ;;  %s1766_s9 = sld [smem:[#allocation2 + $0x31]] }
  0x50   :  { %v1602_v2 = vmul.f32 %v684_v53, %v1478_v33 }
  0x54   :  { %419 = vrot.lane.b32.xlu2 %v418_v4, %s1343_s2 }
  0x55   :  { %405 = vrot.lane.b32.xlu1 %v401_v1, %s1343_s2  ;;  %v244_v1 = vrot.slane %v1526_v58, 1 }
  0x56   :  { %403 = vrot.lane.b32.xlu0 %v402_v8, %s1343_s2  ;;  %v573_v8 = vmul.f32 %v571_v61, %v1478_v33 }
  0x5c   :  { %437 = vrot.lane.b32.xlu2 %v433_v9, %s1343_s2  ;;  %v620_v9 = vstv %s1519_s30  ;;  %s1750_s30 = sld [smem:[#allocation2 + $0x9]] }
  0x5d   :  { %435 = vrot.lane.b32.xlu1 %v434_v15, %s1343_s2  ;;  %v621_v18 = vmul.f32 %v620_v9, %v1469_v30 }
  0x5e   :  { %421 = vrot.lane.b32.xlu0 %v417_v63, %s1343_s2  ;;  %v243_v63 = vrot.slane %v239_v57, 1 }
  0x5f   :  { %v625_v31 = vrot.slane %v621_v18, 1 }
  0x60   :  { %v245_v15 = vsel %vm230_vm0, %v243_v63, %v244_v1  ;;  %v685_v63 = vmul.f32 %v684_v53, %v1469_v30 }
  0x62   :  { %v689_v11 = vrot.slane %v685_v63, 1 }
  0x64   :  { %467 = vrot.lane.b32.xlu2 %v466_v23, %s1344_s4  ;;  %v1565_v23 = vmul.f32 %v250_v16, %v1383_v7 }
  0x65   :  { %453 = vrot.lane.b32.xlu1 %v449_v20, %s1344_s4 }
  0x66   :  { %451 = vrot.lane.b32.xlu0 %v450_v26, %s1344_s4  ;;  %v134_v26 = vmul.f32 %v132_v17, %v1383_v7  ;;  %v256_v38 = vrot.slane %v1565_v23, 1 }
  0x6c   :  { %485 = vrot.lane.b32.xlu2 %v481_v27, %s1344_s4 }
  0x6d   :  { %483 = vrot.lane.b32.xlu1 %v482_v29, %s1344_s4 }
  0x6e   :  { %469 = vrot.lane.b32.xlu0 %v465_v19, %s1344_s4  ;;  %v1473_v32 = vpop.permute.xlu2 %178  ;;  %v622_v19 = vmul.f32 %v620_v9, %v1478_v33 }
  0x70   :  { %v626_v29 = vrot.slane %v622_v19, 1 }
  0x72   :  { %v627_v44 = vsel %vm230_vm0, %v625_v31, %v626_v29 }
  0x74   :  { %524 = vrot.lane.b32.xlu2 %v520_v35, %s1343_s2  ;;  %v129_v35 = vstv %s1542_s8  ;;  %s1763_s8 = sld [smem:[#allocation2 + $0x4a]] }
  0x75   :  { %513 = vrot.lane.b32.xlu1 %v508_v36, %s1343_s2 }
  0x76   :  { %511 = vrot.lane.b32.xlu0 %v507_v37, %s1343_s2  ;;  %v181_v39 = vpop.permute.xlu2 %180  ;;  %v643_v37 = vsel %vm230_vm0, %v641_v21, %v642_v22 }
  0x77   :  { %v185_v59 = vadd.f32 %v181_v39, %v146_v50  ;;  %v136_v39 = vadd.f32 %v134_v26, %v129_v35 }
  0x7c   :  { %539 = vrot.lane.b32.xlu2 %v534_v40, %s1343_s2  ;;  %v653_v40 = vmul.f32 %v652_v34, %v1469_v30 }
  0x7d   :  { %537 = vrot.lane.b32.xlu1 %v533_v41, %s1343_s2  ;;  %v654_v41 = vmul.f32 %v652_v34, %v1478_v33 }
  0x7e   :  { %526 = vrot.lane.b32.xlu0 %v521_v43, %s1343_s2  ;;  %v205_v48 = vpop.permute.xlu2 %204  ;;  %v135_v43 = vadd.f32 %v133_v24, %v129_v35  ;;  %v251_v35 = vmul.f32 %v250_v16, %v1374_v0 }
  0x7f   :  { %v658_v51 = vrot.slane %v654_v41, 1 }
  0x84   :  { %563 = vrot.lane.b32.xlu2 %v559_v52, %s1344_s4  ;;  %v657_v52 = vrot.slane %v653_v40, 1 }
  0x85   :  { %552 = vrot.lane.b32.xlu1 %v547_v54, %s1344_s4 }
  0x86   :  { %550 = vrot.lane.b32.xlu0 %v546_v56, %s1344_s4  ;;  %v220_v62 = vpop.permute.xlu2 %219 }
  0x87   :  { %v224_v3 = vadd.f32 %v220_v62, %v185_v59  ;;  %v166_v4 = vpop.permute.xlu1 %165  ;;  %v668_v59 = vstv %s1573_s10  ;;  %s1769_s10 = sld [smem:[#allocation2 + $0x16]] }
  0x88   :  { %v171_v5 = vadd.f32 %v166_v4, %v140_v60  ;;  %v153_v6 = vpop.permute.xlu0 %152  ;;  %v145_v4 = vadd.f32 %v143_v45, %v131_v47  ;;  %v670_v46 = vmul.f32 %v668_v59, %v1478_v33  ;;  %v690_v47 = vrot.slane %v1602_v2, 1 }
  0x89   :  { %v158_v54 = vadd.f32 %v153_v6, %v135_v43  ;;  %v141_v6 = vadd.f32 %v139_v42, %v130_v55  ;;  %v768_v45 = vstv %s1620_s14  ;;  %s1243_s14 = sld [smem:[#allocation2 + $0x17]] }
  0x8a   :  { %v210_v13 = vadd.f32 %v205_v48, %v171_v5  ;;  %v261_v48 = vadd.f32 %v256_v38, %v224_v3  ;;  %v225_v3 = vstv %s1578_s11  ;;  %v659_v5 = vsel %vm230_vm0, %v657_v52, %v658_v51  ;;  %s1779_s11 = sld [smem:[#allocation2 + $0x42]] }
  0x8b   :  { %v227_v9 = vmul.f32 %v225_v3, %v1383_v7  ;;  %v184_v12 = vadd.f32 %v1473_v32, %v145_v4  ;;  %v674_v55 = vrot.slane %v670_v46, 1  ;;  %v769_v42 = vmul.f32 %v768_v45, %v1469_v30 }
  0x8c   :  { %578 = vrot.lane.b32.xlu2 %v573_v8, %s1344_s4  ;;  %v248_v20 = vadd.f32 %v245_v15, %v210_v13  ;;  %v669_v8 = vmul.f32 %v668_v59, %v1469_v30 }
  0x8d   :  { %576 = vrot.lane.b32.xlu1 %v572_v10, %s1344_s4  ;;  %v226_v10 = vmul.f32 %v225_v3, %v1374_v0  ;;  %v773_v3 = vrot.slane %v769_v42, 2 }
  0x8e   :  { %565 = vrot.lane.b32.xlu0 %v560_v14, %s1344_s4  ;;  %v287_v25 = vpop.permute.xlu2 %286  ;;  %v371_v14 = vstv %s1592_s12  ;;  %v673_v19 = vrot.slane %v669_v8, 1  ;;  %s1789_s12 = sld [smem:[#allocation2 + $0x4c]] }
  0x8f   :  { %v292_v27 = vadd.f32 %v287_v25, %v248_v20  ;;  %v168_v28 = vpop.permute.xlu1 %167  ;;  %v700_v20 = vstv %s1598_s13  ;;  %v232_v25 = vrot.slane %v227_v9, 1  ;;  %v231_v26 = vrot.slane %v226_v10, 1  ;;  %s1816_s13 = sld [smem:[#allocation2 + $0x32]] }
  0x90   :  { %v155_v36 = vpop.permute.xlu0 %154  ;;  %v172_v15 = vadd.f32 %v168_v28, %v141_v6  ;;  %v1628_v31 = vmul.f32 %v371_v14, %v1383_v7  ;;  %v702_v28 = vmul.f32 %v700_v20, %v1478_v33  ;;  %v675_v34 = vsel %vm230_vm0, %v673_v19, %v674_v55 }
  0x91   :  { %v159_v49 = vadd.f32 %v155_v36, %v136_v39  ;;  %v233_v36 = vsel %vm230_vm0, %v231_v26, %v232_v25 }
  0x92   :  { %v377_v39 = vrot.slane %v1628_v31, 2  ;;  %v706_v43 = vrot.slane %v702_v28, 1 }
  0x94   :  { %644 = vrot.lane.b32.xlu2 %v643_v37, %s1343_s2 }
  0x95   :  { %630 = vrot.lane.b32.xlu1 %v626_v29, %s1343_s2  ;;  %v372_v29 = vmul.f32 %v371_v14, %v1374_v0 }
  0x96   :  { %628 = vrot.lane.b32.xlu0 %v627_v44, %s1343_s2  ;;  %v305_v50 = vpop.permute.xlu2 %304 }
  0x97   :  { %v309_v56 = vadd.f32 %v305_v50, %v261_v48  ;;  %v194_v57 = vpop.permute.xlu1 %193  ;;  %v376_v37 = vrot.slane %v372_v29, 2  ;;  %v255_v50 = vrot.slane %v251_v35, 1 }
  0x98   :  { %v198_v60 = vadd.f32 %v194_v57, %v159_v49  ;;  %v192_v61 = vpop.permute.xlu0 %191  ;;  %v770_v57 = vmul.f32 %v768_v45, %v1478_v33 }
  0x99   :  { %v197_v62 = vadd.f32 %v192_v61, %v158_v54  ;;  %v383_v61 = vstv %s1632_s16  ;;  %s1830_s16 = sld [smem:[#allocation2 + $0x2a]] }
  0x9a   :  { %v237_v41 = vadd.f32 %v232_v25, %v198_v60  ;;  %v774_v4 = vrot.slane %v770_v57, 2 }
  0x9b   :  { %v236_v49 = vadd.f32 %v233_v36, %v197_v62  ;;  %v257_v62 = vsel %vm230_vm0, %v255_v50, %v256_v38 }
  0x9c   :  { %662 = vrot.lane.b32.xlu2 %v658_v51, %s1343_s2  ;;  %v752_v51 = vstv %s1623_s15  ;;  %v775_v14 = vsel %vm363_vm1, %v773_v3, %v774_v4  ;;  %s1232_s15 = sld [smem:[#allocation2 + $0xc]] }
  0x9d   :  { %660 = vrot.lane.b32.xlu1 %v659_v5, %s1343_s2  ;;  %v753_v60 = vmul.f32 %v752_v51, %v1469_v30  ;;  %v754_v63 = vmul.f32 %v752_v51, %v1478_v33  ;;  %v1664_v5 = vmul.f32 %v383_v61, %v1383_v7  ;;  %v832_v51 = vstv %s1683_s21  ;;  %s1873_s21 = sld [smem:[#allocation2 + $0x4f]] }
  0x9e   :  { %646 = vrot.lane.b32.xlu0 %v642_v22, %s1343_s2  ;;  %v335_v13 = vpop.permute.xlu2 %334  ;;  %v691_v22 = vsel %vm230_vm0, %v689_v11, %v690_v47  ;;  %v784_v11 = vstv %s1645_s17  ;;  %s1832_s17 = sld [smem:[#allocation2 + $0x4d]] }
  0x9f   :  { %v340_v17 = vadd.f32 %v335_v13, %v292_v27  ;;  %v218_v18 = vpop.permute.xlu1 %217  ;;  %v701_v27 = vmul.f32 %v700_v20, %v1469_v30  ;;  %v757_v6 = vrot.slane %v753_v60, 2  ;;  %v758_v10 = vrot.slane %v754_v63, 2 }
  0xa0   :  { %v223_v21 = vadd.f32 %v218_v18, %v184_v12  ;;  %v207_v24 = vpop.permute.xlu0 %206  ;;  %v384_v60 = vmul.f32 %v383_v61, %v1374_v0 }
  0xa1   :  { %v211_v32 = vadd.f32 %v207_v24, %v172_v15  ;;  %v705_v44 = vrot.slane %v701_v27, 1  ;;  %v785_v15 = vmul.f32 %v784_v11, %v1469_v30  ;;  %v759_v18 = vsel %vm363_vm1, %v757_v6, %v758_v10 }
  0xa2   :  { %v260_v23 = vadd.f32 %v257_v62, %v223_v21  ;;  %v816_v21 = vstv %s1667_s18  ;;  %v388_v61 = vrot.slane %v384_v60, 2  ;;  %s1848_s18 = sld [smem:[#allocation2 + $0x34]] }
  0xa3   :  { %v707_v59 = vsel %vm230_vm0, %v705_v44, %v706_v43  ;;  %v249_v9 = vadd.f32 %v244_v1, %v211_v32  ;;  %v789_v20 = vrot.slane %v785_v15, 2  ;;  %v817_v27 = vmul.f32 %v816_v21, %v1469_v30 }
  0xa4   :  { %692 = vrot.lane.b32.xlu2 %v691_v22, %s1344_s4  ;;  %v800_v22 = vstv %s1237_s19  ;;  %v818_v28 = vmul.f32 %v816_v21, %v1478_v33  ;;  %v876_v15 = vstv %s1710_s23  ;;  %s1851_s19 = sld [smem:[#allocation2 + $0x19]] }
  0xa5   :  { %678 = vrot.lane.b32.xlu1 %v674_v55, %s1344_s4  ;;  %v801_v36 = vmul.f32 %v800_v22, %v1469_v30  ;;  %s1235_s23 = sld [smem:[#allocation2 + $0xf]] }
  0xa6   :  { %676 = vrot.lane.b32.xlu0 %v675_v34, %s1344_s4  ;;  %v353_v40 = vpop.permute.xlu2 %352  ;;  %v358_v34 = vstv %s1226_s20  ;;  %v822_v44 = vrot.slane %v818_v28, 2  ;;  %s1860_s20 = sld [smem:[#allocation2 + $0x45]] }
  0xa7   :  { %v357_v48 = vadd.f32 %v353_v40, %v309_v56  ;;  %v273_v16 = vpop.permute.xlu1 %272  ;;  %v378_v56 = vsel %vm363_vm1, %v376_v37, %v377_v39  ;;  %v802_v37 = vmul.f32 %v800_v22, %v1478_v33  ;;  %v359_v40 = vmul.f32 %v358_v34, %v1374_v0 }
  0xa8   :  { %v277_v52 = vadd.f32 %v273_v16, %v237_v41  ;;  %v271_v53 = vpop.permute.xlu0 %270  ;;  %v381_v2 = vadd.f32 %v378_v56, %v340_v17  ;;  %v786_v17 = vmul.f32 %v784_v11, %v1478_v33  ;;  %v360_v41 = vmul.f32 %v358_v34, %v1383_v7 }
  0xa9   :  { %v276_v54 = vadd.f32 %v271_v53, %v236_v49  ;;  %v806_v49 = vrot.slane %v802_v37, 2  ;;  %v805_v50 = vrot.slane %v801_v36, 2  ;;  %v834_v56 = vmul.f32 %v832_v51, %v1478_v33 }
  0xaa   :  { %v790_v19 = vrot.slane %v786_v17, 2  ;;  %v365_v42 = vrot.slane %v360_v41, 2  ;;  %v496_v0 = vstv %s1695_s22  ;;  %s1895_s22 = sld [smem:[#allocation2 + $0x35]] }
  0xab   :  { %v807_v62 = vsel %vm363_vm1, %v805_v50, %v806_v49  ;;  %v497_v11 = vmul.f32 %v496_v0, %v1469_v30  ;;  %v491_v50 = vstv %s1750_s30  ;;  %s1271_s30 = sld [smem:[#allocation2 + $0x33]] }
  0xac   :  { %710 = vrot.lane.b32.xlu2 %v706_v43, %s1344_s4  ;;  %v791_v35 = vsel %vm363_vm1, %v789_v20, %v790_v19  ;;  %v821_v43 = vrot.slane %v817_v27, 2 }
  0xad   :  { %708 = vrot.lane.b32.xlu1 %v707_v59, %s1344_s4  ;;  %v833_v59 = vmul.f32 %v832_v51, %v1469_v30  ;;  %v596_v51 = vstv %s1259_s7  ;;  %s1241_s7 = sld [smem:[#allocation2 + $0x15]] }
  0xae   :  { %694 = vrot.lane.b32.xlu0 %v690_v47, %s1344_s4  ;;  %v420_v46 = vpop.permute.xlu2 %419  ;;  %v389_v47 = vrot.slane %v1664_v5, 2  ;;  %v823_v57 = vsel %vm363_vm1, %v821_v43, %v822_v44  ;;  %v1777_v60 = vmul.f32 %v596_v51, %v1478_v33 }
  0xaf   :  { %v425_v38 = vadd.f32 %v420_v46, %v381_v2  ;;  %v303_v8 = vpop.permute.xlu1 %302  ;;  %v837_v46 = vrot.slane %v833_v59, 2  ;;  %v493_v59 = vmul.f32 %v491_v50, %v1478_v33 }
  0xb0   :  { %v308_v12 = vadd.f32 %v303_v8, %v260_v23  ;;  %v289_v13 = vpop.permute.xlu0 %288  ;;  %v394_v58 = vadd.f32 %v389_v47, %v357_v48 }
  0xb1   :  { %v293_v55 = vadd.f32 %v289_v13, %v249_v9  ;;  %v390_v13 = vsel %vm363_vm1, %v388_v61, %v389_v47  ;;  %v1737_v47 = vld [vmem:[%s2063_s0 + $0x28] sm:$0xff]  ;;  %v993_v61 = vstv %s1766_s9 }
  0xb2   :  { %v878_v43 = vmul.f32 %v876_v15, %v1737_v47 }
  0xb4   :  { %776 = vrot.lane.b32.xlu2 %v775_v14, %s1343_s2  ;;  %v1728_v14 = vld [vmem:[%s2063_s0 + $0x20] sm:$0xff] }
  0xb5   :  { %762 = vrot.lane.b32.xlu1 %v758_v10, %s1343_s2 }
  0xb6   :  { %760 = vrot.lane.b32.xlu0 %v759_v18, %s1343_s2  ;;  %v438_v1 = vpop.permute.xlu2 %437  ;;  %v863_v18 = vstv %s1714_s24  ;;  %s1911_s24 = sld [smem:[#allocation2 + $0x50]] }
  0xb7   :  { %v442_v24 = vadd.f32 %v438_v1, %v394_v58  ;;  %v321_v25 = vpop.permute.xlu1 %320  ;;  %v501_v58 = vstv %s1707_s1  ;;  %s1246_s1 = sld [smem:[#allocation2 + $0x1a]] }
  0xb8   :  { %v325_v26 = vadd.f32 %v321_v25, %v277_v52  ;;  %v319_v32 = vpop.permute.xlu0 %318  ;;  %v877_v25 = vmul.f32 %v876_v15, %v1728_v14  ;;  %v503_v22 = vmul.f32 %v501_v58, %v1478_v33  ;;  %v994_v15 = vmul.f32 %v993_v61, %v1728_v14 }
  0xb9   :  { %v324_v29 = vadd.f32 %v319_v32, %v276_v54  ;;  %v364_v54 = vrot.slane %v359_v40, 2  ;;  %v865_v32 = vmul.f32 %v863_v18, %v1737_v47 }
  0xba   :  { %v370_v3 = vadd.f32 %v365_v42, %v325_v26 }
  0xbb   :  { %v366_v63 = vsel %vm363_vm1, %v364_v54, %v365_v42 }
  0xbc   :  { %794 = vrot.lane.b32.xlu2 %v790_v19, %s1343_s2 }
  0xbd   :  { %792 = vrot.lane.b32.xlu1 %v791_v35, %s1343_s2 }
  0xbe   :  { %778 = vrot.lane.b32.xlu0 %v774_v4, %s1343_s2  ;;  %v468_v45 = vpop.permute.xlu2 %467  ;;  %v838_v4 = vrot.slane %v834_v56, 2  ;;  %v597_v56 = vmul.f32 %v596_v51, %v1469_v30 }
  0xbf   :  { %v473_v48 = vadd.f32 %v468_v45, %v425_v38  ;;  %v351_v16 = vpop.permute.xlu1 %350  ;;  %v369_v38 = vadd.f32 %v366_v63, %v324_v29  ;;  %v864_v29 = vmul.f32 %v863_v18, %v1728_v14  ;;  %v928_v63 = vstv %s1763_s8  ;;  %s1244_s8 = sld [smem:[#allocation2 + $0x18]] }
  0xc0   :  { %v356_v52 = vadd.f32 %v351_v16, %v308_v12  ;;  %v337_v53 = vpop.permute.xlu0 %336  ;;  %v839_v12 = vsel %vm363_vm1, %v837_v46, %v838_v4  ;;  %v602_v46 = vrot.slane %v1777_v60, 1 }
  0xc1   :  { %v341_v7 = vadd.f32 %v337_v53, %v293_v55  ;;  %v499_v55 = vadd.f32 %v497_v11, %v473_v48  ;;  %v902_v48 = vstv %s1240_s6  ;;  %v930_v11 = vmul.f32 %v928_v63, %v1737_v47  ;;  %s2000_s6 = sld [smem:[#allocation2 + $0x4e]] }
  0xc2   :  { %v393_v5 = vadd.f32 %v390_v13, %v356_v52 }
  0xc3   :  { %v382_v20 = vadd.f32 %v377_v39, %v341_v7  ;;  %v889_v39 = vstv %s1731_s27  ;;  %v904_v7 = vmul.f32 %v902_v48, %v1737_v47 }
  0xc4   :  { %824 = vrot.lane.b32.xlu2 %v823_v57, %s1344_s4  ;;  %v891_v37 = vmul.f32 %v889_v39, %v1737_v47  ;;  %v890_v41 = vmul.f32 %v889_v39, %v1728_v14  ;;  %v903_v57 = vmul.f32 %v902_v48, %v1728_v14 }
  0xc5   :  { %810 = vrot.lane.b32.xlu1 %v806_v49, %s1344_s4 }
  0xc6   :  { %808 = vrot.lane.b32.xlu0 %v807_v62, %s1344_s4  ;;  %v486_v2 = vpop.permute.xlu2 %485  ;;  %v492_v62 = vmul.f32 %v491_v50, %v1469_v30  ;;  %v1041_v50 = vstv %s1816_s13 }
  0xc7   :  { %v490_v23 = vadd.f32 %v486_v2, %v442_v24  ;;  %v406_v6 = vpop.permute.xlu1 %405 }
  0xc8   :  { %v410_v8 = vadd.f32 %v406_v6, %v370_v3  ;;  %v404_v9 = vpop.permute.xlu0 %403 }
  0xc9   :  { %v409_v10 = vadd.f32 %v404_v9, %v369_v38  ;;  %v505_v31 = vadd.f32 %v503_v22, %v490_v23 }
  0xcc   :  { %842 = vrot.lane.b32.xlu2 %v838_v4, %s1344_s4  ;;  %v601_v4 = vrot.slane %v597_v56, 1  ;;  %v584_v56 = vstv %s1232_s15 }
  0xcd   :  { %840 = vrot.lane.b32.xlu1 %v839_v12, %s1344_s4  ;;  %v502_v12 = vmul.f32 %v501_v58, %v1469_v30  ;;  %v498_v58 = vmul.f32 %v496_v0, %v1478_v33 }
  0xce   :  { %826 = vrot.lane.b32.xlu0 %v822_v44, %s1344_s4  ;;  %v525_v17 = vpop.permute.xlu2 %524  ;;  %v915_v44 = vstv %s1754_s5  ;;  %v603_v18 = vsel %vm230_vm0, %v601_v4, %v602_v46  ;;  %v586_v4 = vmul.f32 %v584_v56, %v1478_v33  ;;  %s1983_s5 = sld [smem:[#allocation2 + $0x4b]] }
  0xcf   :  { %v530_v1 = vadd.f32 %v525_v17, %v499_v55  ;;  %v436_v19 = vpop.permute.xlu1 %435  ;;  %v916_v54 = vmul.f32 %v915_v44, %v1728_v14  ;;  %v929_v55 = vmul.f32 %v928_v63, %v1728_v14  ;;  %v995_v17 = vmul.f32 %v993_v61, %v1737_v47 }
  0xd0   :  { %v441_v21 = vadd.f32 %v436_v19, %v393_v5  ;;  %v422_v24 = vpop.permute.xlu0 %421  ;;  %v917_v5 = vmul.f32 %v915_v44, %v1737_v47  ;;  %v608_v19 = vstv %s1779_s11 }
  0xd1   :  { %v426_v26 = vadd.f32 %v422_v24, %v382_v20  ;;  %v998_v24 = vrot.slane %v994_v15, 1 }
  0xd4   :  { %881 = vrot.lane.b32.xlu2 %v877_v25, %s1343_s2  ;;  %v999_v25 = vrot.slane %v995_v17, 1  ;;  %v590_v17 = vrot.slane %v586_v4, 1 }
  0xd5   :  { %870 = vrot.lane.b32.xlu1 %v865_v32, %s1343_s2 }
  0xd6   :  { %868 = vrot.lane.b32.xlu0 %v864_v29, %s1343_s2  ;;  %v540_v27 = vpop.permute.xlu2 %539 }
  0xd7   :  { %v544_v28 = vadd.f32 %v540_v27, %v505_v31  ;;  %v454_v34 = vpop.permute.xlu1 %453 }
  0xd8   :  { %v458_v35 = vadd.f32 %v454_v34, %v410_v8  ;;  %v452_v36 = vpop.permute.xlu0 %451  ;;  %v977_v8 = vstv %s1769_s10 }
  0xd9   :  { %v457_v40 = vadd.f32 %v452_v36, %v409_v10  ;;  %v979_v20 = vmul.f32 %v977_v8, %v1737_v47 }
  0xda   :  { %v495_v3 = vadd.f32 %v493_v59, %v458_v35  ;;  %v1836_v59 = vmul.f32 %v1041_v50, %v1737_v47 }
  0xdb   :  { %v494_v38 = vadd.f32 %v492_v62, %v457_v40  ;;  %v983_v27 = vrot.slane %v979_v20, 1 }
  0xdc   :  { %896 = vrot.lane.b32.xlu2 %v891_v37, %s1343_s2  ;;  %v1000_v37 = vsel %vm230_vm0, %v998_v24, %v999_v25  ;;  %v609_v24 = vmul.f32 %v608_v19, %v1469_v30 }
  0xdd   :  { %894 = vrot.lane.b32.xlu1 %v890_v41, %s1343_s2 }
  0xde   :  { %883 = vrot.lane.b32.xlu0 %v878_v43, %s1343_s2  ;;  %v564_v45 = vpop.permute.xlu2 %563 }
  0xdf   :  { %v569_v16 = vadd.f32 %v564_v45, %v530_v1  ;;  %v484_v49 = vpop.permute.xlu1 %483  ;;  %v978_v1 = vmul.f32 %v977_v8, %v1728_v14 }
  0xe0   :  { %v489_v52 = vadd.f32 %v484_v49, %v441_v21  ;;  %v470_v53 = vpop.permute.xlu0 %469 }
  0xe1   :  { %v474_v42 = vadd.f32 %v470_v53, %v426_v26  ;;  %v606_v21 = vadd.f32 %v603_v18, %v569_v16  ;;  %v1813_v26 = vmul.f32 %v608_v19, %v1478_v33  ;;  %v982_v29 = vrot.slane %v978_v1, 1 }
  0xe2   :  { %v504_v22 = vadd.f32 %v502_v12, %v489_v52  ;;  %v1057_v12 = vstv %s1832_s17  ;;  %v613_v19 = vrot.slane %v609_v24, 1 }
  0xe3   :  { %v500_v39 = vadd.f32 %v498_v58, %v474_v42  ;;  %v614_v40 = vrot.slane %v1813_v26, 1  ;;  %v984_v44 = vsel %vm230_vm0, %v982_v29, %v983_v27  ;;  %v1025_v42 = vstv %s1243_s14 }
  0xe4   :  { %920 = vrot.lane.b32.xlu2 %v916_v54, %s1344_s4  ;;  %v1026_v63 = vmul.f32 %v1025_v42, %v1728_v14  ;;  %v1058_v20 = vmul.f32 %v1057_v12, %v1728_v14 }
  0xe5   :  { %909 = vrot.lane.b32.xlu1 %v904_v7, %s1344_s4 }
  0xe6   :  { %907 = vrot.lane.b32.xlu0 %v903_v57, %s1344_s4  ;;  %v579_v2 = vpop.permute.xlu2 %578  ;;  %v1042_v57 = vmul.f32 %v1041_v50, %v1728_v14  ;;  %v740_v50 = vstv %s1860_s20 }
  0xe7   :  { %v583_v23 = vadd.f32 %v579_v2, %v544_v28  ;;  %v514_v6 = vpop.permute.xlu1 %513  ;;  %v1009_v28 = vstv %s1789_s12  ;;  %v1027_v2 = vmul.f32 %v1025_v42, %v1737_v47 }
  0xe8   :  { %v518_v9 = vadd.f32 %v514_v6, %v495_v3  ;;  %v512_v10 = vpop.permute.xlu0 %511  ;;  %v1010_v41 = vmul.f32 %v1009_v28, %v1728_v14  ;;  %v1011_v43 = vmul.f32 %v1009_v28, %v1737_v47  ;;  %v585_v3 = vmul.f32 %v584_v56, %v1469_v30 }
  0xe9   :  { %v517_v13 = vadd.f32 %v512_v10, %v494_v38  ;;  %v619_v45 = vadd.f32 %v614_v40, %v583_v23  ;;  %v1046_v61 = vrot.slane %v1042_v57, 1  ;;  %v1047_v23 = vrot.slane %v1836_v59, 1 }
  0xea   :  { %v1015_v16 = vrot.slane %v1011_v43, 1  ;;  %v1014_v49 = vrot.slane %v1010_v41, 1  ;;  %v728_v38 = vstv %s1830_s16  ;;  %v1031_v10 = vrot.slane %v1027_v2, 1 }
  0xeb   :  { %v589_v15 = vrot.slane %v585_v3, 1  ;;  %v1048_v18 = vsel %vm230_vm0, %v1046_v61, %v1047_v23  ;;  %v729_v1 = vmul.f32 %v728_v38, %v1469_v30  ;;  %v1856_v58 = vmul.f32 %v728_v38, %v1478_v33 }
  0xec   :  { %935 = vrot.lane.b32.xlu2 %v930_v11, %s1344_s4  ;;  %v1016_v62 = vsel %vm230_vm0, %v1014_v49, %v1015_v16  ;;  %v1030_v11 = vrot.slane %v1026_v63, 1  ;;  %v1125_v30 = vstv %s1848_s18  ;;  %v1141_v2 = vstv %s1873_s21 }
  0xed   :  { %933 = vrot.lane.b32.xlu1 %v929_v55, %s1344_s4  ;;  %v734_v29 = vrot.slane %v1856_v58, 2  ;;  %v1143_v38 = vmul.f32 %v1141_v2, %v1737_v47 }
  0xee   :  { %922 = vrot.lane.b32.xlu0 %v917_v5, %s1344_s4  ;;  %v645_v32 = vpop.permute.xlu2 %644 }
  0xef   :  { %v650_v0 = vadd.f32 %v645_v32, %v606_v21  ;;  %v538_v31 = vpop.permute.xlu1 %537  ;;  %v1059_v21 = vmul.f32 %v1057_v12, %v1737_v47  ;;  %v591_v32 = vsel %vm230_vm0, %v589_v15, %v590_v17 }
  0xf0   :  { %v543_v34 = vadd.f32 %v538_v31, %v504_v22  ;;  %v527_v35 = vpop.permute.xlu0 %526  ;;  %v733_v22 = vrot.slane %v729_v1, 2 }
  0xf1   :  { %v531_v36 = vadd.f32 %v527_v35, %v500_v39  ;;  %v1063_v39 = vrot.slane %v1059_v21, 1 }
  0xf4   :  { %1001 = vrot.lane.b32.xlu2 %v1000_v37, %s1343_s2 }
  0xf5   :  { %987 = vrot.lane.b32.xlu1 %v983_v27, %s1343_s2  ;;  %v1062_v27 = vrot.slane %v1058_v20, 1  ;;  %v716_v20 = vstv %s1235_s23 }
  0xf6   :  { %985 = vrot.lane.b32.xlu0 %v984_v44, %s1343_s2  ;;  %v663_v48 = vpop.permute.xlu2 %662  ;;  %v1126_v44 = vmul.f32 %v1125_v30, %v1728_v14 }
  0xf7   :  { %v667_v51 = vadd.f32 %v663_v48, %v619_v45  ;;  %v553_v52 = vpop.permute.xlu1 %552  ;;  %v1127_v45 = vmul.f32 %v1125_v30, %v1737_v47  ;;  %v1064_v48 = vsel %vm230_vm0, %v1062_v27, %v1063_v39 }
  0xf8   :  { %v557_v53 = vadd.f32 %v553_v52, %v518_v9  ;;  %v551_v54 = vpop.permute.xlu0 %550 }
  0xf9   :  { %v556_v7 = vadd.f32 %v551_v54, %v517_v13  ;;  %v1130_v54 = vrot.slane %v1126_v44, 2  ;;  %v1131_v42 = vrot.slane %v1127_v45, 2 }
  0xfa   :  { %v595_v31 = vadd.f32 %v590_v17, %v557_v53  ;;  %v1157_v17 = vstv %s1246_s1 }
  0xfb   :  { %v594_v35 = vadd.f32 %v591_v32, %v556_v7  ;;  %v1892_v7 = vmul.f32 %v740_v50, %v1478_v33  ;;  %v1132_v61 = vsel %vm363_vm1, %v1130_v54, %v1131_v42  ;;  %v1158_v24 = vmul.f32 %v1157_v17, %v1728_v14  ;;  %v1311_v32 = vld [vmem:[%s2063_s0 + $0x10] sm:$0xff] }
  0xfc   :  { %1019 = vrot.lane.b32.xlu2 %v1015_v16, %s1343_s2  ;;  %v735_v16 = vsel %vm363_vm1, %v733_v22, %v734_v29  ;;  %v717_v22 = vmul.f32 %v1311_v32, %v716_v20 }
  0xfd   :  { %1017 = vrot.lane.b32.xlu1 %v1016_v62, %s1343_s2 }
  0xfe   :  { %1003 = vrot.lane.b32.xlu0 %v999_v25, %s1343_s2  ;;  %v693_v6 = vpop.permute.xlu2 %692  ;;  %v1032_v25 = vsel %vm230_vm0, %v1030_v11, %v1031_v10  ;;  %v1173_v11 = vstv %s1895_s22 }
  0xff   :  { %v698_v8 = vadd.f32 %v693_v6, %v650_v0  ;;  %v577_v9 = vpop.permute.xlu1 %576  ;;  %v1142_v6 = vmul.f32 %v1141_v2, %v1728_v14  ;;  %v1175_v1 = vmul.f32 %v1173_v11, %v1737_v47 }
 0x100   :  { %v582_v13 = vadd.f32 %v577_v9, %v543_v34  ;;  %v566_v55 = vpop.permute.xlu0 %565  ;;  %v1147_v9 = vrot.slane %v1143_v38, 2 }
 0x101   :  { %v570_v5 = vadd.f32 %v566_v55, %v531_v36  ;;  %v1109_v36 = vstv %s1851_s19  ;;  %v738_v53 = vadd.f32 %v735_v16, %v698_v8  ;;  %v1179_v27 = vrot.slane %v1175_v1, 2 }
 0x102   :  { %v1110_v49 = vmul.f32 %v1109_v36, %v1728_v14  ;;  %v1111_v52 = vmul.f32 %v1109_v36, %v1737_v47  ;;  %v1189_v36 = vstv %s1911_s24 }
 0x103   :  { %v607_v62 = vadd.f32 %v602_v46, %v570_v5  ;;  %v1190_v16 = vmul.f32 %v1189_v36, %v1728_v14 }
 0x104   :  { %1049 = vrot.lane.b32.xlu2 %v1048_v18, %s1344_s4  ;;  %v1114_v59 = vrot.slane %v1110_v49, 2  ;;  %v1115_v63 = vrot.slane %v1111_v52, 2  ;;  %v1174_v18 = vmul.f32 %v1173_v11, %v1728_v14  ;;  %v1191_v49 = vmul.f32 %v1189_v36, %v1737_v47 }
 0x105   :  { %1035 = vrot.lane.b32.xlu1 %v1031_v10, %s1344_s4  ;;  %v1146_v10 = vrot.slane %v1142_v6, 2 }
 0x106   :  { %1033 = vrot.lane.b32.xlu0 %v1032_v25, %s1344_s4  ;;  %v711_v0 = vpop.permute.xlu2 %710  ;;  %v1116_v8 = vsel %vm363_vm1, %v1114_v59, %v1115_v63  ;;  %v1159_v25 = vmul.f32 %v1157_v17, %v1737_v47  ;;  %v853_v59 = vstv %s1927_s29 }
 0x107   :  { %v715_v28 = vadd.f32 %v711_v0, %v667_v51  ;;  %v631_v34 = vpop.permute.xlu1 %630  ;;  %v615_v51 = vsel %vm230_vm0, %v613_v19, %v614_v40  ;;  %v1148_v21 = vsel %vm363_vm1, %v1146_v10, %v1147_v9  ;;  %v1312_v0 = vld [vmem:[%s2063_s0 + $0x18] sm:$0xff]  ;;  %s1941_s0 = sld [smem:[#allocation2 + $0x48]] }
 0x108   :  { %v635_v37 = vadd.f32 %v631_v34, %v595_v31  ;;  %v629_v41 = vpop.permute.xlu0 %628  ;;  %v618_v26 = vadd.f32 %v615_v51, %v582_v13  ;;  %v718_v31 = vmul.f32 %v1312_v0, %v716_v20  ;;  %v1163_v34 = vrot.slane %v1159_v25, 2 }
 0x109   :  { %v634_v43 = vadd.f32 %v629_v41, %v594_v35  ;;  %v1162_v35 = vrot.slane %v1158_v24, 2  ;;  %v741_v51 = vmul.f32 %v1311_v32, %v740_v50 }
 0x10a   :  { %v722_v44 = vrot.slane %v718_v31, 2 }
 0x10b   :  { %v1164_v52 = vsel %vm363_vm1, %v1162_v35, %v1163_v34  ;;  %v855_v35 = vmul.f32 %v853_v59, %v1737_v47 }
 0x10c   :  { %1067 = vrot.lane.b32.xlu2 %v1063_v39, %s1344_s4  ;;  %v1178_v39 = vrot.slane %v1174_v18, 2 }
 0x10d   :  { %1065 = vrot.lane.b32.xlu1 %v1064_v48, %s1344_s4 }
 0x10e   :  { %1051 = vrot.lane.b32.xlu0 %v1047_v23, %s1344_s4  ;;  %v777_v57 = vpop.permute.xlu2 %776  ;;  %v746_v23 = vrot.slane %v1892_v7, 2  ;;  %v1180_v48 = vsel %vm363_vm1, %v1178_v39, %v1179_v27 }
 0x10f   :  { %v782_v40 = vadd.f32 %v777_v57, %v738_v53  ;;  %v661_v56 = vpop.permute.xlu1 %660  ;;  %v1195_v57 = vrot.slane %v1191_v49, 2 }
 0x110   :  { %v666_v3 = vadd.f32 %v661_v56, %v618_v26  ;;  %v647_v4 = vpop.permute.xlu0 %646  ;;  %v751_v60 = vadd.f32 %v746_v23, %v715_v28  ;;  %v1194_v26 = vrot.slane %v1190_v16, 2 }
 0x111   :  { %v651_v33 = vadd.f32 %v647_v4, %v607_v62  ;;  %v854_v4 = vmul.f32 %v853_v59, %v1728_v14 }
 0x114   :  { %1133 = vrot.lane.b32.xlu2 %v1132_v61, %s1343_s2 }
 0x115   :  { %1119 = vrot.lane.b32.xlu1 %v1115_v63, %s1343_s2 }
 0x116   :  { %1117 = vrot.lane.b32.xlu0 %v1116_v8, %s1343_s2  ;;  %v795_v46 = vpop.permute.xlu2 %794 }
 0x117   :  { %v799_v12 = vadd.f32 %v795_v46, %v751_v60  ;;  %v679_v13 = vpop.permute.xlu1 %678  ;;  %v858_v60 = vstv %s1941_s0 }
 0x118   :  { %v683_v55 = vadd.f32 %v679_v13, %v635_v37  ;;  %v677_v15 = vpop.permute.xlu0 %676 }
 0x119   :  { %v682_v5 = vadd.f32 %v677_v15, %v634_v43  ;;  %v721_v43 = vrot.slane %v717_v22, 2 }
 0x11b   :  { %v723_v53 = vsel %vm363_vm1, %v721_v43, %v722_v44 }
 0x11c   :  { %1151 = vrot.lane.b32.xlu2 %v1147_v9, %s1343_s2  ;;  %v726_v62 = vadd.f32 %v723_v53, %v682_v5 }
 0x11d   :  { %1149 = vrot.lane.b32.xlu1 %v1148_v21, %s1343_s2 }
 0x11e   :  { %1135 = vrot.lane.b32.xlu0 %v1131_v42, %s1343_s2  ;;  %v825_v30 = vpop.permute.xlu2 %824  ;;  %v727_v42 = vadd.f32 %v722_v44, %v683_v55  ;;  %s1238_s2 = sld [smem:[#allocation2 + $0x12]] }
 0x11f   :  { %v830_v19 = vadd.f32 %v825_v30, %v782_v40  ;;  %v709_v28 = vpop.permute.xlu1 %708  ;;  %v745_v40 = vrot.slane %v741_v51, 2 }
 0x120   :  { %v714_v37 = vadd.f32 %v709_v28, %v666_v3  ;;  %v695_v41 = vpop.permute.xlu0 %694 }
 0x121   :  { %v699_v45 = vadd.f32 %v695_v41, %v651_v33  ;;  %v1196_v33 = vsel %vm363_vm1, %v1194_v26, %v1195_v57  ;;  %v747_v61 = vsel %vm363_vm1, %v745_v40, %v746_v23  ;;  %v856_v6 = vadd.f32 %v854_v4, %v830_v19 }
 0x122   :  { %v750_v8 = vadd.f32 %v747_v61, %v714_v37  ;;  %v860_v23 = vmul.f32 %v858_v60, %v1737_v47  ;;  %v965_v61 = vstv %s1983_s5 }
 0x123   :  { %v739_v10 = vadd.f32 %v734_v29, %v699_v45 }
 0x124   :  { %1181 = vrot.lane.b32.xlu2 %v1180_v48, %s1344_s4  ;;  %v848_v24 = vstv %s1238_s2 }
 0x125   :  { %1167 = vrot.lane.b32.xlu1 %v1163_v34, %s1344_s4  ;;  %v850_v32 = vmul.f32 %v848_v24, %v1737_v47  ;;  %v849_v22 = vmul.f32 %v848_v24, %v1728_v14  ;;  %v859_v34 = vmul.f32 %v858_v60, %v1728_v14 }
 0x126   :  { %1165 = vrot.lane.b32.xlu0 %v1164_v52, %s1344_s4  ;;  %v843_v54 = vpop.permute.xlu2 %842 }
 0x127   :  { %v847_v50 = vadd.f32 %v843_v54, %v799_v12  ;;  %v763_v56 = vpop.permute.xlu1 %762 }
 0x128   :  { %v767_v63 = vadd.f32 %v763_v56, %v727_v42  ;;  %v761_v2 = vpop.permute.xlu0 %760 }
 0x129   :  { %v766_v3 = vadd.f32 %v761_v2, %v726_v62  ;;  %v862_v13 = vadd.f32 %v860_v23, %v847_v50 }
 0x12c   :  { %1199 = vrot.lane.b32.xlu2 %v1195_v57, %s1344_s4 }
 0x12d   :  { %1197 = vrot.lane.b32.xlu1 %v1196_v33, %s1344_s4 }
 0x12e   :  { %1183 = vrot.lane.b32.xlu0 %v1179_v27, %s1344_s4  ;;  %v882_v38 = vpop.permute.xlu2 %881  ;;  %s1268_s4 = sld [smem:[#allocation2 + $0x30]] }
 0x12f   :  { %v887_v46 = vadd.f32 %v882_v38, %v856_v6  ;;  %v793_v9 = vpop.permute.xlu1 %792 }
 0x130   :  { %v798_v11 = vadd.f32 %v793_v9, %v750_v8  ;;  %v779_v12 = vpop.permute.xlu0 %778 }
 0x131   :  { %v783_v7 = vadd.f32 %v779_v12, %v739_v10 }
 0x134   :  { %v953_v42 = vstv %s1268_s4 }
 0x135   :  { %v954_v59 = vmul.f32 %v953_v42, %v1728_v14  ;;  %v1981_v40 = vmul.f32 %v953_v42, %v1737_v47  ;;  %v966_v42 = vmul.f32 %v965_v61, %v1728_v14 }
 0x136   :  { %v897_v55 = vpop.permute.xlu2 %896 }
 0x137   :  { %v1955_v15 = vadd.f32 %v897_v55, %v862_v13  ;;  %v811_v17 = vpop.permute.xlu1 %810  ;;  %v958_v56 = vrot.slane %v954_v59, 1  ;;  %v959_v62 = vrot.slane %v1981_v40, 1 }
 0x138   :  { %v815_v5 = vadd.f32 %v811_v17, %v767_v63  ;;  %v809_v18 = vpop.permute.xlu0 %808  ;;  %v1085_v63 = vstv %s1271_s30 }
 0x139   :  { %v814_v1 = vadd.f32 %v809_v18, %v766_v3  ;;  %v960_v33 = vsel %vm230_vm0, %v958_v56, %v959_v62  ;;  %v1086_v6 = vmul.f32 %v1085_v63, %v1728_v14  ;;  %v1996_v38 = vmul.f32 %v1085_v63, %v1737_v47 }
 0x13a   :  { %v852_v31 = vadd.f32 %v850_v32, %v815_v5  ;;  %v1097_v5 = vstv %s2000_s6 }
 0x13b   :  { %v851_v27 = vadd.f32 %v849_v22, %v814_v1  ;;  %v1090_v9 = vrot.slane %v1086_v6, 2  ;;  %v1091_v10 = vrot.slane %v1996_v38, 2 }
 0x13d   :  { %v1092_v17 = vsel %vm363_vm1, %v1090_v9, %v1091_v10 }
 0x13e   :  { %v921_v20 = vpop.permute.xlu2 %920 }
 0x13f   :  { %v841_v21 = vpop.permute.xlu1 %840  ;;  %v926_v3 = vadd.f32 %v921_v20, %v887_v46  ;;  %v967_v46 = vmul.f32 %v965_v61, %v1737_v47 }
 0x140   :  { %v846_v25 = vadd.f32 %v841_v21, %v798_v11  ;;  %v827_v58 = vpop.permute.xlu0 %826  ;;  %v2010_v21 = vmul.f32 %v1097_v5, %v1737_v47 }
 0x141   :  { %v831_v29 = vadd.f32 %v827_v58, %v783_v7  ;;  %v963_v60 = vadd.f32 %v960_v33, %v926_v3  ;;  %v971_v23 = vrot.slane %v967_v46, 1  ;;  %v970_v3 = vrot.slane %v966_v42, 1 }
 0x142   :  { %v861_v37 = vadd.f32 %v859_v34, %v846_v25  ;;  %v1103_v32 = vrot.slane %v2010_v21, 2 }
 0x143   :  { %v857_v43 = vadd.f32 %v855_v35, %v831_v29  ;;  %v941_v29 = vstv %s1241_s7 }
 0x146   :  { %v936_v0 = vpop.permute.xlu2 %935 }
 0x147   :  { %v871_v39 = vpop.permute.xlu1 %870  ;;  %v940_v7 = vadd.f32 %v936_v0, %v1955_v15 }
 0x148   :  { %v1959_v30 = vadd.f32 %v871_v39, %v852_v31  ;;  %v869_v19 = vpop.permute.xlu0 %868  ;;  %v942_v39 = vmul.f32 %v941_v29, %v1728_v14 }
 0x149   :  { %v1961_v28 = vadd.f32 %v869_v19, %v851_v27  ;;  %v976_v1 = vadd.f32 %v971_v23, %v940_v7  ;;  %v943_v27 = vmul.f32 %v941_v29, %v1737_v47 }
 0x14a   :  { %v946_v35 = vrot.slane %v942_v39, 1 }
 0x14e   :  { %v1002_v36 = vpop.permute.xlu2 %1001 }
 0x14f   :  { %v895_v41 = vpop.permute.xlu1 %894  ;;  %v1007_v11 = vadd.f32 %v1002_v36, %v963_v60  ;;  %v947_v36 = vrot.slane %v943_v27, 1 }
 0x150   :  { %v1965_v44 = vadd.f32 %v895_v41, %v861_v37  ;;  %v884_v45 = vpop.permute.xlu0 %883 }
 0x151   :  { %v1967_v48 = vadd.f32 %v884_v45, %v857_v43  ;;  %v1073_v43 = vstv %s1244_s8  ;;  %v948_v59 = vsel %vm230_vm0, %v946_v35, %v947_v36 }
 0x152   :  { %v1074_v56 = vmul.f32 %v1073_v43, %v1728_v14  ;;  %v1075_v63 = vmul.f32 %v1073_v43, %v1737_v47  ;;  %v972_v47 = vsel %vm230_vm0, %v970_v3, %v971_v23 }
 0x154   :  { %v1078_v33 = vrot.slane %v1074_v56, 2  ;;  %v1079_v61 = vrot.slane %v1075_v63, 2 }
 0x156   :  { %v1020_v16 = vpop.permute.xlu2 %1019 }
 0x157   :  { %v1969_v49 = vpop.permute.xlu1 %909  ;;  %v1024_v24 = vadd.f32 %v1020_v16, %v976_v1 }
 0x158   :  { %v1971_v51 = vpop.permute.xlu0 %907  ;;  %v914_v16 = vadd.f32 %v1969_v49, %v1959_v30 }
 0x15e   :  { %v1050_v52 = vpop.permute.xlu2 %1049 }
 0x15f   :  { %v1973_v53 = vpop.permute.xlu1 %933  ;;  %v1055_v13 = vadd.f32 %v1050_v52, %v1007_v11  ;;  %v1098_v11 = vmul.f32 %v1097_v5, %v1728_v14 }
 0x160   :  { %v1975_v54 = vpop.permute.xlu0 %922  ;;  %v939_v6 = vadd.f32 %v1973_v53, %v1965_v44 }
 0x161   :  { %v1095_v20 = vadd.f32 %v1092_v17, %v1055_v13  ;;  %v927_v9 = vadd.f32 %v1975_v54, %v1967_v48  ;;  %v1102_v17 = vrot.slane %v1098_v11, 2 }
 0x162   :  { %v975_v7 = vadd.f32 %v972_v47, %v939_v6 }
 0x166   :  { %v1068_v57 = vpop.permute.xlu2 %1067 }
 0x167   :  { %v1977_v26 = vpop.permute.xlu1 %987  ;;  %v1072_v15 = vadd.f32 %v1068_v57, %v1024_v24  ;;  %v913_v57 = vadd.f32 %v1971_v51, %v1961_v28 }
 0x168   :  { %v1985_v50 = vpop.permute.xlu0 %985 }
 0x169   :  { %v1108_v19 = vadd.f32 %v1103_v32, %v1072_v15  ;;  %v951_v30 = vadd.f32 %v948_v59, %v913_v57 }
 0x16b   :  { %v991_v28 = vadd.f32 %v1985_v50, %v951_v30  ;;  %v964_v50 = vadd.f32 %v959_v62, %v927_v9 }
 0x16e   :  { %v1134_v2 = vpop.permute.xlu2 %1133 }
 0x16f   :  { %v1988_v4 = vpop.permute.xlu1 %1017  ;;  %v1139_v25 = vadd.f32 %v1134_v2, %v1095_v20  ;;  %v952_v2 = vadd.f32 %v947_v36, %v914_v16 }
 0x170   :  { %v1998_v8 = vpop.permute.xlu0 %1003  ;;  %v1023_v44 = vadd.f32 %v1988_v4, %v975_v7 }
 0x171   :  { %v992_v49 = vadd.f32 %v1977_v26, %v952_v2  ;;  %v1080_v26 = vsel %vm363_vm1, %v1078_v33, %v1079_v61 }
 0x176   :  { %v1152_v12 = vpop.permute.xlu2 %1151 }
 0x177   :  { %v1036_v55 = vpop.permute.xlu1 %1035  ;;  %v1156_v34 = vadd.f32 %v1152_v12, %v1108_v19 }
 0x178   :  { %v1034_v18 = vpop.permute.xlu0 %1033  ;;  %v1040_v60 = vadd.f32 %v1036_v55, %v992_v49  ;;  %v1008_v55 = vadd.f32 %v1998_v8, %v964_v50 }
 0x179   :  { %v1039_v12 = vadd.f32 %v1034_v18, %v991_v28  ;;  %v1104_v18 = vsel %vm363_vm1, %v1102_v17, %v1103_v32 }
 0x17a   :  { %v1084_v13 = vadd.f32 %v1079_v61, %v1040_v60 }
 0x17b   :  { %v1083_v1 = vadd.f32 %v1080_v26, %v1039_v12 }
 0x17e   :  { %v1182_v58 = vpop.permute.xlu2 %1181 }
 0x17f   :  { %v1187_v22 = vadd.f32 %v1182_v58, %v1139_v25  ;;  %v1066_v0 = vpop.permute.xlu1 %1065 }
 0x180   :  { %v1052_v31 = vpop.permute.xlu0 %1051  ;;  %v1071_v23 = vadd.f32 %v1066_v0, %v1023_v44 }
 0x181   :  { %1303 = vst.msk [vmem:[%s2066_s3 + $0x10] sm:$0xff] %vm1205_vm2, %v1187_v22  ;;  %v1056_v5 = vadd.f32 %v1052_v31, %v1008_v55 }
 0x182   :  { %v1107_v40 = vadd.f32 %v1104_v18, %v1071_v23 }
 0x183   :  { %v1096_v62 = vadd.f32 %v1091_v10, %v1056_v5 }
 0x186   :  { %v1200_v37 = vpop.permute.xlu2 %1199 }
 0x187   :  { %v1204_v41 = vadd.f32 %v1200_v37, %v1156_v34  ;;  %v1120_v45 = vpop.permute.xlu1 %1119 }
 0x188   :  { %v1118_v52 = vpop.permute.xlu0 %1117  ;;  %v1124_v53 = vadd.f32 %v1120_v45, %v1084_v13 }
 0x189   :  { %1306 = vst.msk [vmem:[%s2066_s3 + $0x28] sm:$0x3f] %vm1207_vm3, %v1204_v41  ;;  %v1123_v48 = vadd.f32 %v1118_v52, %v1083_v1 }
 0x18f   :  { %v1150_v51 = vpop.permute.xlu1 %1149 }
 0x190   :  { %v1136_v46 = vpop.permute.xlu0 %1135  ;;  %v1155_v4 = vadd.f32 %v1150_v51, %v1107_v40 }
 0x191   :  { %v1140_v8 = vadd.f32 %v1136_v46, %v1096_v62 }
 0x197   :  { %v1168_v54 = vpop.permute.xlu1 %1167 }
 0x198   :  { %v1172_v20 = vadd.f32 %v1168_v54, %v1124_v53  ;;  %v1166_v14 = vpop.permute.xlu0 %1165 }
 0x199   :  { %v1171_v21 = vadd.f32 %v1166_v14, %v1123_v48 }
 0x19a   :  { %1208 = vst.msk [vmem:[%s2066_s3 + $0x8] sm:$0x3f] %vm1207_vm3, %v1172_v20 }
 0x19b   :  { %1206 = vst.msk [vmem:[%s2066_s3] sm:$0xff] %vm1205_vm2, %v1171_v21 }
 0x19f   :  { %v1198_v24 = vpop.permute.xlu1 %1197 }
 0x1a0   :  { %v1203_v25 = vadd.f32 %v1198_v24, %v1155_v4  ;;  %v1184_v58 = vpop.permute.xlu0 %1183 }
 0x1a1   :  { %v1188_v15 = vadd.f32 %v1184_v58, %v1140_v8 }
 0x1a2   :  { %1305 = vst.msk [vmem:[%s2066_s3 + $0x20] sm:$0xff] %vm1205_vm2, %v1203_v25 }
 0x1a3   :  { %1304 = vst.msk [vmem:[%s2066_s3 + $0x18] sm:$0x3f] %vm1207_vm3, %v1188_v15 }
 0x1a4   :  { %1219 = vsyncpa [#allocation3], 1 }
 0x1a5   :  { %1220 = vsyncpa [#allocation5], 1 }

</bundles_post_ra>
